<compile_context>
chip_gen: v7x
topology: tpu7x:2x2x1
jax: 0.10.0
libtpu: 0.0.40
codegen_flags: <defaults>
</compile_context>

<pallas_src>
import jax
import jax.numpy as jnp
from jax import lax
from jax.experimental import pallas as pl
from jax.experimental.pallas import tpu as pltpu


# ----------------------------------------------------------------------------
# Fused kernel (B_tile batch images per grid step).
#   x_ref  : (B, Ho, 2, Wo, 2*Cin)   free-reshaped NHWC input tile
#   w1_ref : (9, Cin,  Cmid)         conv1 weights (BN scale folded in)
#   b1_ref : (1, Cmid)               conv1 bias (+BN shift folded in)
#   w2_ref : (9, Cmid, Cpad)         conv2 weights, out-channels padded to 128k
#   b2_ref : (1, Cpad)
#   o_ref  : (1, B, Ho, Wo, Cpad)    lane-dense output block (last dim 128k)
#   pp1/pp2: VMEM scratch, zero-padded pooled / conv1 activations
# ----------------------------------------------------------------------------
def down_kernel(x_ref, w1_ref, b1_ref, w2_ref, b2_ref,
                o_ref, pp1_ref, pp2_ref):
    B, Ho, _, Wo, two_cin = x_ref.shape
    cin = two_cin // 2
    c_mid = w1_ref.shape[-1]
    c_pad = o_ref.shape[-1]

    # ---- zero the padded scratches ONCE; only the interior is written each
    # step and the border is never touched, so it stays zero. -----------------
    @pl.when(pl.program_id(0) == 0)
    def _():
        pp1_ref[...] = jnp.zeros(pp1_ref.shape, pp1_ref.dtype)
        pp2_ref[...] = jnp.zeros(pp2_ref.shape, pp2_ref.dtype)

    # ---- 2x2 max pool (all static slices, no strided access) ---------------
    top = x_ref[:, :, 0, :, :]                       # rows h = 2*py   (B,Ho,Wo,2*Cin)
    bot = x_ref[:, :, 1, :, :]                       # rows h = 2*py+1
    v = jnp.maximum(top, bot)
    pooled = jnp.maximum(v[..., :cin], v[..., cin:])  # (B, Ho, Wo, Cin)

    # ---- conv3x3 (zero pad=1) + folded BN + ReLU ----------------------------
    # dx sublane shift hoisted out of the 9-tap loop (3 shifted views instead
    # of 9); 9 accumulating matmuls replace the im2col concatenate.
    def conv_bn_relu(src, pp_ref, w_ref, b_ref):
        pp_ref[:, 1:Ho + 1, 1:Wo + 1, :] = src.astype(pp_ref.dtype)
        acc = None
        for dx in range(3):
            shifted = pp_ref[:, :, dx:dx + Wo, :]        # (B, Ho+2, Wo, C)
            for dy in range(3):
                patch = shifted[:, dy:dy + Ho, :, :].reshape(B * Ho * Wo, -1)
                t = jnp.dot(patch, w_ref[dy * 3 + dx],
                            preferred_element_type=jnp.float32)
                acc = t if acc is None else acc + t
        return jnp.maximum(acc + b_ref[...], 0.0)        # (B*Ho*Wo, Cout)

    y1 = conv_bn_relu(pooled, pp1_ref, w1_ref, b1_ref)            # (M, Cmid)
    y2 = conv_bn_relu(y1.reshape(B, Ho, Wo, c_mid), pp2_ref,
                      w2_ref, b2_ref)                             # (M, Cpad)

    # Leading-dim split only (last dim unchanged) -> layout-compatible store.
    o_ref[...] = y2.reshape(1, B, Ho, Wo, c_pad).astype(o_ref.dtype)


def down_pallas(x_nhwc, w1, b1, w2, b2, b_tile):
    N, H, W, Cin = x_nhwc.shape
    Ho, Wo = H // 2, W // 2
    Cmid = w1.shape[-1]
    Cpad = w2.shape[-1]
    assert N % b_tile == 0
    n_blocks = N // b_tile

    # Pure bitcast reshape (row-major compatible): no data movement in HBM.
    xr = x_nhwc.reshape(N, Ho, 2, Wo, 2 * Cin)

    M = b_tile * Ho * Wo
    flops = 2 * N * Ho * Wo * 9 * (Cin * Cmid + Cmid * Cpad)
    bytes_accessed = 4 * (xr.size + w1.size + b1.size + w2.size + b2.size
                          + n_blocks * M * Cpad)

    return pl.pallas_call(
        down_kernel,
        out_shape=jax.ShapeDtypeStruct((n_blocks, b_tile, Ho, Wo, Cpad),
                                       x_nhwc.dtype),
        grid=(n_blocks,),
        in_specs=[
            pl.BlockSpec((b_tile, Ho, 2, Wo, 2 * Cin),
                         lambda n: (n, 0, 0, 0, 0)),
            pl.BlockSpec((9, Cin, Cmid), lambda n: (0, 0, 0)),
            pl.BlockSpec((1, Cmid), lambda n: (0, 0)),
            pl.BlockSpec((9, Cmid, Cpad), lambda n: (0, 0, 0)),
            pl.BlockSpec((1, Cpad), lambda n: (0, 0)),
        ],
        out_specs=pl.BlockSpec((1, b_tile, Ho, Wo, Cpad),
                               lambda n: (n, 0, 0, 0, 0)),
        scratch_shapes=[
            pltpu.VMEM((b_tile, Ho + 2, Wo + 2, Cin), jnp.float32),
            pltpu.VMEM((b_tile, Ho + 2, Wo + 2, Cmid), jnp.float32),
        ],
        compiler_params=pltpu.CompilerParams(
            dimension_semantics=("parallel",)),   # v7x: dual-TC when n_blocks>=2
        cost_estimate=pl.CostEstimate(flops=flops, transcendentals=0,
                                      bytes_accessed=bytes_accessed),
    )(xr, w1, b1, w2, b2)


def pick_b_tile(n, ho, wo, m_target=128):
    """Grow B_tile (divisor of N) until the im2col M dim reaches m_target."""
    # TODO(synk): on v7x also prefer keeping n // b_tile divisible by 2 when N
    #             is large so both TensorCores get grid steps.
    bt = 1
    while bt < n and bt * ho * wo < m_target and n % (bt * 2) == 0:
        bt *= 2
    return bt


# ----------------------------------------------------------------------------
# Parameter setup (deterministic, PyTorch-like init) and BN folding.
# ----------------------------------------------------------------------------
def init_conv_bn(key, cin, cout):
    kw, kb, kg, kbe, km, kv = jax.random.split(key, 6)
    fan_in = cin * 9
    bound = 1.0 / (fan_in ** 0.5)
    w = jax.random.uniform(kw, (cout, cin, 3, 3), jnp.float32, -bound, bound)
    b = jax.random.uniform(kb, (cout,), jnp.float32, -bound, bound)
    gamma = jax.random.uniform(kg, (cout,), jnp.float32, 0.5, 1.5)
    beta = 0.1 * jax.random.normal(kbe, (cout,), jnp.float32)
    mean = 0.1 * jax.random.normal(km, (cout,), jnp.float32)
    var = jax.random.uniform(kv, (cout,), jnp.float32, 0.5, 1.5)
    return dict(w=w, b=b, gamma=gamma, beta=beta, mean=mean, var=var)


def fold_bn(p, eps=1e-5, pad_out_to=None):
    """Fold eval-mode BN into the conv: returns (w9, bias).

    w9[k, i, o] with tap k = ky*3 + kx already scaled by gamma/sqrt(var+eps);
    optionally zero-pads the output-channel dim to `pad_out_to` lanes.
    """
    scale = p["gamma"] / jnp.sqrt(p["var"] + eps)                  # (Cout,)
    bias = (p["b"] - p["mean"]) * scale + p["beta"]                # (Cout,)
    o_ch, i_ch = p["w"].shape[0], p["w"].shape[1]
    # (O, I, KY, KX) -> (KY, KX, I, O) -> (9, I, O); tap k = ky*3 + kx
    w9 = jnp.transpose(p["w"], (2, 3, 1, 0)).reshape(9, i_ch, o_ch)
    w9 = w9 * scale[None, None, :]                                 # fold BN scale
    b = bias.reshape(1, o_ch)
    if pad_out_to is not None and pad_out_to > o_ch:
        w9 = jnp.pad(w9, ((0, 0), (0, 0), (0, pad_out_to - o_ch)))
        b = jnp.pad(b, ((0, 0), (0, pad_out_to - o_ch)))
    return w9, b


@jax.jit
def down_forward(x_nchw, p1, p2):
    """Down.forward: NCHW in, NCHW out (inference-mode BN)."""
    N, _, H, W = x_nchw.shape
    Ho, Wo = H // 2, W // 2
    out_ch = p2["w"].shape[0]
    c_pad = ((out_ch + 127) // 128) * 128          # lane-dense final output

    x = jnp.transpose(x_nchw, (0, 2, 3, 1))        # -> NHWC
    w1, b1 = fold_bn(p1)
    w2, b2 = fold_bn(p2, pad_out_to=c_pad)

    b_tile = pick_b_tile(N, Ho, Wo)
    y = down_pallas(x, w1, b1, w2, b2, b_tile)     # (N//bt, bt, Ho, Wo, Cpad)
    y = y[..., :out_ch].reshape(N, Ho, Wo, out_ch)
    return jnp.transpose(y, (0, 3, 1, 2))          # -> NCHW


# ----------------------------------------------------------------------------
# Pure-JAX reference (mirrors PyTorch semantics in NCHW) for a sanity check.
# ----------------------------------------------------------------------------
def ref_down(x, p1, p2, eps=1e-5):
    y = lax.reduce_window(x, -jnp.inf, lax.max,
                          (1, 1, 2, 2), (1, 1, 2, 2), "VALID")

    def block(y, p):
        y = lax.conv_general_dilated(
            y, p["w"], (1, 1), ((1, 1), (1, 1)),
            dimension_numbers=("NCHW", "OIHW", "NCHW"))
        y = y + p["b"][None, :, None, None]
        y = ((y - p["mean"][None, :, None, None])
             / jnp.sqrt(p["var"][None, :, None, None] + eps)
             * p["gamma"][None, :, None, None]
             + p["beta"][None, :, None, None])
        return jnp.maximum(y, 0.0)

    return block(block(y, p1), p2)


if __name__ == "__main__":
    key = jax.random.PRNGKey(0)
    kx, k1, k2 = jax.random.split(key, 3)

    in_ch, out_ch = 4, 8
    x = jax.random.normal(kx, (2, in_ch, 16, 16), jnp.float32)     # NCHW

    p1 = init_conv_bn(k1, in_ch, out_ch)
    p2 = init_conv_bn(k2, out_ch, out_ch)

    out = jax.block_until_ready(down_forward(x, p1, p2))
    ref = jax.block_until_ready(ref_down(x, p1, p2))

    assert out.shape == (2, out_ch, 8, 8), out.shape
    # f32 everywhere; 5e-4 allows for MXU-pass / summation-order differences
    # between the 9 accumulating tap matmuls and XLA's conv.
    assert jnp.allclose(out, ref, rtol=5e-4, atol=5e-4), \
        float(jnp.abs(out - ref).max())

    print("KERNEL_OK")
</pallas_src>

<mosaic_0001>
module attributes {stable_mosaic.version = 11 : i64} {
  func.func @down_kernel(%arg0: i32, %arg1: memref<2x8x2x8x8xf32, #tpu.memory_space<vmem>>, %arg2: memref<9x4x8xf32, #tpu.memory_space<vmem>>, %arg3: memref<1x8xf32, #tpu.memory_space<vmem>>, %arg4: memref<9x8x128xf32, #tpu.memory_space<vmem>>, %arg5: memref<1x128xf32, #tpu.memory_space<vmem>>, %arg6: memref<1x2x8x8x128xf32, #tpu.memory_space<vmem>>, %arg7: memref<2x10x10x4xf32, #tpu.memory_space<vmem>>, %arg8: memref<2x10x10x8xf32, #tpu.memory_space<vmem>>) attributes {dimension_semantics = [#tpu.dimension_semantics<parallel>], iteration_bounds = array<i64: 1>, scalar_prefetch = 0 : i64, scratch_operands = 2 : i64, tpu.core_type = #tpu.core_type<tc>, window_params = [{transform_indices = @transform_0, window_bounds = array<i64: 2, 8, 2, 8, 8>}, {pipeline_mode = #tpu.pipeline_mode<synchronous>, transform_indices = @transform_1, window_bounds = array<i64: 9, 4, 8>}, {pipeline_mode = #tpu.pipeline_mode<synchronous>, transform_indices = @transform_2, window_bounds = array<i64: 1, 8>}, {pipeline_mode = #tpu.pipeline_mode<synchronous>, transform_indices = @transform_3, window_bounds = array<i64: 9, 8, 128>}, {pipeline_mode = #tpu.pipeline_mode<synchronous>, transform_indices = @transform_4, window_bounds = array<i64: 1, 128>}, {transform_indices = @transform_5, window_bounds = array<i64: 1, 2, 8, 8, 128>}]} {
    %c0_i32 = arith.constant 0 : i32
    %0 = arith.cmpi eq, %arg0, %c0_i32 : i32
    %1 = arith.extui %0 : i1 to i32
    %c0_i32_0 = arith.constant 0 : i32
    %2 = arith.cmpi ne, %1, %c0_i32_0 : i32
    scf.if %2 {
      %cst_116 = arith.constant 0.000000e+00 : f32
      %138 = vector.broadcast %cst_116 : f32 to vector<2x10x10x4xf32>
      %c0_117 = arith.constant 0 : index
      %c0_118 = arith.constant 0 : index
      %c0_119 = arith.constant 0 : index
      %c0_120 = arith.constant 0 : index
      %139 = vector.load %arg7[%c0_117, %c0_118, %c0_119, %c0_120] : memref<2x10x10x4xf32, #tpu.memory_space<vmem>>, vector<2x10x10x4xf32>
      tpu.vector_store %arg7[%c0_117, %c0_118, %c0_119, %c0_120], %138 {strides = array<i32>} : memref<2x10x10x4xf32, #tpu.memory_space<vmem>>, vector<2x10x10x4xf32>,
      %cst_121 = arith.constant 0.000000e+00 : f32
      %140 = vector.broadcast %cst_121 : f32 to vector<2x10x10x8xf32>
      %c0_122 = arith.constant 0 : index
      %c0_123 = arith.constant 0 : index
      %c0_124 = arith.constant 0 : index
      %c0_125 = arith.constant 0 : index
      %141 = vector.load %arg8[%c0_122, %c0_123, %c0_124, %c0_125] : memref<2x10x10x8xf32, #tpu.memory_space<vmem>>, vector<2x10x10x8xf32>
      tpu.vector_store %arg8[%c0_122, %c0_123, %c0_124, %c0_125], %140 {strides = array<i32>} : memref<2x10x10x8xf32, #tpu.memory_space<vmem>>, vector<2x10x10x8xf32>,
    } else {
    }
    %c0 = arith.constant 0 : index
    %c0_1 = arith.constant 0 : index
    %c0_2 = arith.constant 0 : index
    %c0_3 = arith.constant 0 : index
    %c0_4 = arith.constant 0 : index
    %3 = vector.load %arg1[%c0, %c0_1, %c0_2, %c0_3, %c0_4] : memref<2x8x2x8x8xf32, #tpu.memory_space<vmem>>, vector<2x8x1x8x8xf32>
    %4 = vector.shape_cast %3 : vector<2x8x1x8x8xf32> to vector<2x8x8x8xf32>
    %c0_5 = arith.constant 0 : index
    %c0_6 = arith.constant 0 : index
    %c1 = arith.constant 1 : index
    %c0_7 = arith.constant 0 : index
    %c0_8 = arith.constant 0 : index
    %5 = vector.load %arg1[%c0_5, %c0_6, %c1, %c0_7, %c0_8] : memref<2x8x2x8x8xf32, #tpu.memory_space<vmem>>, vector<2x8x1x8x8xf32>
    %6 = vector.shape_cast %5 : vector<2x8x1x8x8xf32> to vector<2x8x8x8xf32>
    %7 = arith.maximumf %4, %6 : vector<2x8x8x8xf32>
    %8 = vector.extract_strided_slice %7 {offsets = [0, 0, 0, 0], sizes = [2, 8, 8, 4], strides = [1, 1, 1, 1]} : vector<2x8x8x8xf32> to vector<2x8x8x4xf32>
    %9 = vector.extract_strided_slice %7 {offsets = [0, 0, 0, 4], sizes = [2, 8, 8, 4], strides = [1, 1, 1, 1]} : vector<2x8x8x8xf32> to vector<2x8x8x4xf32>
    %10 = arith.maximumf %8, %9 : vector<2x8x8x4xf32>
    %c0_9 = arith.constant 0 : index
    %c1_10 = arith.constant 1 : index
    %c1_11 = arith.constant 1 : index
    %c0_12 = arith.constant 0 : index
    %11 = vector.load %arg7[%c0_9, %c1_10, %c1_11, %c0_12] : memref<2x10x10x4xf32, #tpu.memory_space<vmem>>, vector<2x8x8x4xf32>
    tpu.vector_store %arg7[%c0_9, %c1_10, %c1_11, %c0_12], %10 {strides = array<i32>} : memref<2x10x10x4xf32, #tpu.memory_space<vmem>>, vector<2x8x8x4xf32>,
    %c0_13 = arith.constant 0 : index
    %c0_14 = arith.constant 0 : index
    %c0_15 = arith.constant 0 : index
    %c0_16 = arith.constant 0 : index
    %12 = vector.load %arg7[%c0_13, %c0_14, %c0_15, %c0_16] : memref<2x10x10x4xf32, #tpu.memory_space<vmem>>, vector<2x10x8x4xf32>
    %13 = vector.extract_strided_slice %12 {offsets = [0, 0, 0, 0], sizes = [2, 8, 8, 4], strides = [1, 1, 1, 1]} : vector<2x10x8x4xf32> to vector<2x8x8x4xf32>
    %14 = vector.shape_cast %13 : vector<2x8x8x4xf32> to vector<128x4xf32>
    %c0_17 = arith.constant 0 : index
    %c0_18 = arith.constant 0 : index
    %c0_19 = arith.constant 0 : index
    %15 = vector.load %arg2[%c0_17, %c0_18, %c0_19] : memref<9x4x8xf32, #tpu.memory_space<vmem>>, vector<1x4x8xf32>
    %16 = vector.shape_cast %15 : vector<1x4x8xf32> to vector<4x8xf32>
    %cst = arith.constant dense<0.000000e+00> : vector<128x8xf32>
    %17 = tpu.matmul %14, %16, %cst {dimension_numbers = #tpu.dot_dimension_numbers<[1], [0], [0], [1], [0, 0, 1, 1], [], []>} : vector<128x4xf32>, vector<4x8xf32>, vector<128x8xf32> -> vector<128x8xf32>
    %18 = vector.extract_strided_slice %12 {offsets = [0, 1, 0, 0], sizes = [2, 8, 8, 4], strides = [1, 1, 1, 1]} : vector<2x10x8x4xf32> to vector<2x8x8x4xf32>
    %19 = vector.shape_cast %18 : vector<2x8x8x4xf32> to vector<128x4xf32>
    %c3 = arith.constant 3 : index
    %c0_20 = arith.constant 0 : index
    %c0_21 = arith.constant 0 : index
    %20 = vector.load %arg2[%c3, %c0_20, %c0_21] : memref<9x4x8xf32, #tpu.memory_space<vmem>>, vector<1x4x8xf32>
    %21 = vector.shape_cast %20 : vector<1x4x8xf32> to vector<4x8xf32>
    %cst_22 = arith.constant dense<0.000000e+00> : vector<128x8xf32>
    %22 = tpu.matmul %19, %21, %cst_22 {dimension_numbers = #tpu.dot_dimension_numbers<[1], [0], [0], [1], [0, 0, 1, 1], [], []>} : vector<128x4xf32>, vector<4x8xf32>, vector<128x8xf32> -> vector<128x8xf32>
    %23 = arith.addf %17, %22 : vector<128x8xf32>
    %24 = vector.extract_strided_slice %12 {offsets = [0, 2, 0, 0], sizes = [2, 8, 8, 4], strides = [1, 1, 1, 1]} : vector<2x10x8x4xf32> to vector<2x8x8x4xf32>
    %25 = vector.shape_cast %24 : vector<2x8x8x4xf32> to vector<128x4xf32>
    %c6 = arith.constant 6 : index
    %c0_23 = arith.constant 0 : index
    %c0_24 = arith.constant 0 : index
    %26 = vector.load %arg2[%c6, %c0_23, %c0_24] : memref<9x4x8xf32, #tpu.memory_space<vmem>>, vector<1x4x8xf32>
    %27 = vector.shape_cast %26 : vector<1x4x8xf32> to vector<4x8xf32>
    %cst_25 = arith.constant dense<0.000000e+00> : vector<128x8xf32>
    %28 = tpu.matmul %25, %27, %cst_25 {dimension_numbers = #tpu.dot_dimension_numbers<[1], [0], [0], [1], [0, 0, 1, 1], [], []>} : vector<128x4xf32>, vector<4x8xf32>, vector<128x8xf32> -> vector<128x8xf32>
    %29 = arith.addf %23, %28 : vector<128x8xf32>
    %c0_26 = arith.constant 0 : index
    %c0_27 = arith.constant 0 : index
    %c1_28 = arith.constant 1 : index
    %c0_29 = arith.constant 0 : index
    %30 = vector.load %arg7[%c0_26, %c0_27, %c1_28, %c0_29] : memref<2x10x10x4xf32, #tpu.memory_space<vmem>>, vector<2x10x8x4xf32>
    %31 = vector.extract_strided_slice %30 {offsets = [0, 0, 0, 0], sizes = [2, 8, 8, 4], strides = [1, 1, 1, 1]} : vector<2x10x8x4xf32> to vector<2x8x8x4xf32>
    %32 = vector.shape_cast %31 : vector<2x8x8x4xf32> to vector<128x4xf32>
    %c1_30 = arith.constant 1 : index
    %c0_31 = arith.constant 0 : index
    %c0_32 = arith.constant 0 : index
    %33 = vector.load %arg2[%c1_30, %c0_31, %c0_32] : memref<9x4x8xf32, #tpu.memory_space<vmem>>, vector<1x4x8xf32>
    %34 = vector.shape_cast %33 : vector<1x4x8xf32> to vector<4x8xf32>
    %cst_33 = arith.constant dense<0.000000e+00> : vector<128x8xf32>
    %35 = tpu.matmul %32, %34, %cst_33 {dimension_numbers = #tpu.dot_dimension_numbers<[1], [0], [0], [1], [0, 0, 1, 1], [], []>} : vector<128x4xf32>, vector<4x8xf32>, vector<128x8xf32> -> vector<128x8xf32>
    %36 = arith.addf %29, %35 : vector<128x8xf32>
    %37 = vector.extract_strided_slice %30 {offsets = [0, 1, 0, 0], sizes = [2, 8, 8, 4], strides = [1, 1, 1, 1]} : vector<2x10x8x4xf32> to vector<2x8x8x4xf32>
    %38 = vector.shape_cast %37 : vector<2x8x8x4xf32> to vector<128x4xf32>
    %c4 = arith.constant 4 : index
    %c0_34 = arith.constant 0 : index
    %c0_35 = arith.constant 0 : index
    %39 = vector.load %arg2[%c4, %c0_34, %c0_35] : memref<9x4x8xf32, #tpu.memory_space<vmem>>, vector<1x4x8xf32>
    %40 = vector.shape_cast %39 : vector<1x4x8xf32> to vector<4x8xf32>
    %cst_36 = arith.constant dense<0.000000e+00> : vector<128x8xf32>
    %41 = tpu.matmul %38, %40, %cst_36 {dimension_numbers = #tpu.dot_dimension_numbers<[1], [0], [0], [1], [0, 0, 1, 1], [], []>} : vector<128x4xf32>, vector<4x8xf32>, vector<128x8xf32> -> vector<128x8xf32>
    %42 = arith.addf %36, %41 : vector<128x8xf32>
    %43 = vector.extract_strided_slice %30 {offsets = [0, 2, 0, 0], sizes = [2, 8, 8, 4], strides = [1, 1, 1, 1]} : vector<2x10x8x4xf32> to vector<2x8x8x4xf32>
    %44 = vector.shape_cast %43 : vector<2x8x8x4xf32> to vector<128x4xf32>
    %c7 = arith.constant 7 : index
    %c0_37 = arith.constant 0 : index
    %c0_38 = arith.constant 0 : index
    %45 = vector.load %arg2[%c7, %c0_37, %c0_38] : memref<9x4x8xf32, #tpu.memory_space<vmem>>, vector<1x4x8xf32>
    %46 = vector.shape_cast %45 : vector<1x4x8xf32> to vector<4x8xf32>
    %cst_39 = arith.constant dense<0.000000e+00> : vector<128x8xf32>
    %47 = tpu.matmul %44, %46, %cst_39 {dimension_numbers = #tpu.dot_dimension_numbers<[1], [0], [0], [1], [0, 0, 1, 1], [], []>} : vector<128x4xf32>, vector<4x8xf32>, vector<128x8xf32> -> vector<128x8xf32>
    %48 = arith.addf %42, %47 : vector<128x8xf32>
    %c0_40 = arith.constant 0 : index
    %c0_41 = arith.constant 0 : index
    %c2 = arith.constant 2 : index
    %c0_42 = arith.constant 0 : index
    %49 = vector.load %arg7[%c0_40, %c0_41, %c2, %c0_42] : memref<2x10x10x4xf32, #tpu.memory_space<vmem>>, vector<2x10x8x4xf32>
    %50 = vector.extract_strided_slice %49 {offsets = [0, 0, 0, 0], sizes = [2, 8, 8, 4], strides = [1, 1, 1, 1]} : vector<2x10x8x4xf32> to vector<2x8x8x4xf32>
    %51 = vector.shape_cast %50 : vector<2x8x8x4xf32> to vector<128x4xf32>
    %c2_43 = arith.constant 2 : index
    %c0_44 = arith.constant 0 : index
    %c0_45 = arith.constant 0 : index
    %52 = vector.load %arg2[%c2_43, %c0_44, %c0_45] : memref<9x4x8xf32, #tpu.memory_space<vmem>>, vector<1x4x8xf32>
    %53 = vector.shape_cast %52 : vector<1x4x8xf32> to vector<4x8xf32>
    %cst_46 = arith.constant dense<0.000000e+00> : vector<128x8xf32>
    %54 = tpu.matmul %51, %53, %cst_46 {dimension_numbers = #tpu.dot_dimension_numbers<[1], [0], [0], [1], [0, 0, 1, 1], [], []>} : vector<128x4xf32>, vector<4x8xf32>, vector<128x8xf32> -> vector<128x8xf32>
    %55 = arith.addf %48, %54 : vector<128x8xf32>
    %56 = vector.extract_strided_slice %49 {offsets = [0, 1, 0, 0], sizes = [2, 8, 8, 4], strides = [1, 1, 1, 1]} : vector<2x10x8x4xf32> to vector<2x8x8x4xf32>
    %57 = vector.shape_cast %56 : vector<2x8x8x4xf32> to vector<128x4xf32>
    %c5 = arith.constant 5 : index
    %c0_47 = arith.constant 0 : index
    %c0_48 = arith.constant 0 : index
    %58 = vector.load %arg2[%c5, %c0_47, %c0_48] : memref<9x4x8xf32, #tpu.memory_space<vmem>>, vector<1x4x8xf32>
    %59 = vector.shape_cast %58 : vector<1x4x8xf32> to vector<4x8xf32>
    %cst_49 = arith.constant dense<0.000000e+00> : vector<128x8xf32>
    %60 = tpu.matmul %57, %59, %cst_49 {dimension_numbers = #tpu.dot_dimension_numbers<[1], [0], [0], [1], [0, 0, 1, 1], [], []>} : vector<128x4xf32>, vector<4x8xf32>, vector<128x8xf32> -> vector<128x8xf32>
    %61 = arith.addf %55, %60 : vector<128x8xf32>
    %62 = vector.extract_strided_slice %49 {offsets = [0, 2, 0, 0], sizes = [2, 8, 8, 4], strides = [1, 1, 1, 1]} : vector<2x10x8x4xf32> to vector<2x8x8x4xf32>
    %63 = vector.shape_cast %62 : vector<2x8x8x4xf32> to vector<128x4xf32>
    %c8 = arith.constant 8 : index
    %c0_50 = arith.constant 0 : index
    %c0_51 = arith.constant 0 : index
    %64 = vector.load %arg2[%c8, %c0_50, %c0_51] : memref<9x4x8xf32, #tpu.memory_space<vmem>>, vector<1x4x8xf32>
    %65 = vector.shape_cast %64 : vector<1x4x8xf32> to vector<4x8xf32>
    %cst_52 = arith.constant dense<0.000000e+00> : vector<128x8xf32>
    %66 = tpu.matmul %63, %65, %cst_52 {dimension_numbers = #tpu.dot_dimension_numbers<[1], [0], [0], [1], [0, 0, 1, 1], [], []>} : vector<128x4xf32>, vector<4x8xf32>, vector<128x8xf32> -> vector<128x8xf32>
    %67 = arith.addf %61, %66 : vector<128x8xf32>
    %c0_53 = arith.constant 0 : index
    %c0_54 = arith.constant 0 : index
    %68 = vector.load %arg3[%c0_53, %c0_54] : memref<1x8xf32, #tpu.memory_space<vmem>>, vector<1x8xf32>
    %69 = vector.broadcast %68 : vector<1x8xf32> to vector<128x8xf32>
    %70 = arith.addf %67, %69 : vector<128x8xf32>
    %cst_55 = arith.constant 0.000000e+00 : f32
    %71 = vector.broadcast %cst_55 : f32 to vector<128x8xf32>
    %72 = arith.maximumf %70, %71 : vector<128x8xf32>
    %73 = vector.shape_cast %72 : vector<128x8xf32> to vector<2x8x8x8xf32>
    %c0_56 = arith.constant 0 : index
    %c1_57 = arith.constant 1 : index
    %c1_58 = arith.constant 1 : index
    %c0_59 = arith.constant 0 : index
    %74 = vector.load %arg8[%c0_56, %c1_57, %c1_58, %c0_59] : memref<2x10x10x8xf32, #tpu.memory_space<vmem>>, vector<2x8x8x8xf32>
    tpu.vector_store %arg8[%c0_56, %c1_57, %c1_58, %c0_59], %73 {strides = array<i32>} : memref<2x10x10x8xf32, #tpu.memory_space<vmem>>, vector<2x8x8x8xf32>,
    %c0_60 = arith.constant 0 : index
    %c0_61 = arith.constant 0 : index
    %c0_62 = arith.constant 0 : index
    %c0_63 = arith.constant 0 : index
    %75 = vector.load %arg8[%c0_60, %c0_61, %c0_62, %c0_63] : memref<2x10x10x8xf32, #tpu.memory_space<vmem>>, vector<2x10x8x8xf32>
    %76 = vector.extract_strided_slice %75 {offsets = [0, 0, 0, 0], sizes = [2, 8, 8, 8], strides = [1, 1, 1, 1]} : vector<2x10x8x8xf32> to vector<2x8x8x8xf32>
    %77 = vector.shape_cast %76 : vector<2x8x8x8xf32> to vector<128x8xf32>
    %c0_64 = arith.constant 0 : index
    %c0_65 = arith.constant 0 : index
    %c0_66 = arith.constant 0 : index
    %78 = vector.load %arg4[%c0_64, %c0_65, %c0_66] : memref<9x8x128xf32, #tpu.memory_space<vmem>>, vector<1x8x128xf32>
    %79 = vector.shape_cast %78 : vector<1x8x128xf32> to vector<8x128xf32>
    %cst_67 = arith.constant dense<0.000000e+00> : vector<128x128xf32>
    %80 = tpu.matmul %77, %79, %cst_67 {dimension_numbers = #tpu.dot_dimension_numbers<[1], [0], [0], [1], [0, 0, 1, 1], [], []>} : vector<128x8xf32>, vector<8x128xf32>, vector<128x128xf32> -> vector<128x128xf32>
    %81 = vector.extract_strided_slice %75 {offsets = [0, 1, 0, 0], sizes = [2, 8, 8, 8], strides = [1, 1, 1, 1]} : vector<2x10x8x8xf32> to vector<2x8x8x8xf32>
    %82 = vector.shape_cast %81 : vector<2x8x8x8xf32> to vector<128x8xf32>
    %c3_68 = arith.constant 3 : index
    %c0_69 = arith.constant 0 : index
    %c0_70 = arith.constant 0 : index
    %83 = vector.load %arg4[%c3_68, %c0_69, %c0_70] : memref<9x8x128xf32, #tpu.memory_space<vmem>>, vector<1x8x128xf32>
    %84 = vector.shape_cast %83 : vector<1x8x128xf32> to vector<8x128xf32>
    %cst_71 = arith.constant dense<0.000000e+00> : vector<128x128xf32>
    %85 = tpu.matmul %82, %84, %cst_71 {dimension_numbers = #tpu.dot_dimension_numbers<[1], [0], [0], [1], [0, 0, 1, 1], [], []>} : vector<128x8xf32>, vector<8x128xf32>, vector<128x128xf32> -> vector<128x128xf32>
    %86 = arith.addf %80, %85 : vector<128x128xf32>
    %87 = vector.extract_strided_slice %75 {offsets = [0, 2, 0, 0], sizes = [2, 8, 8, 8], strides = [1, 1, 1, 1]} : vector<2x10x8x8xf32> to vector<2x8x8x8xf32>
    %88 = vector.shape_cast %87 : vector<2x8x8x8xf32> to vector<128x8xf32>
    %c6_72 = arith.constant 6 : index
    %c0_73 = arith.constant 0 : index
    %c0_74 = arith.constant 0 : index
    %89 = vector.load %arg4[%c6_72, %c0_73, %c0_74] : memref<9x8x128xf32, #tpu.memory_space<vmem>>, vector<1x8x128xf32>
    %90 = vector.shape_cast %89 : vector<1x8x128xf32> to vector<8x128xf32>
    %cst_75 = arith.constant dense<0.000000e+00> : vector<128x128xf32>
    %91 = tpu.matmul %88, %90, %cst_75 {dimension_numbers = #tpu.dot_dimension_numbers<[1], [0], [0], [1], [0, 0, 1, 1], [], []>} : vector<128x8xf32>, vector<8x128xf32>, vector<128x128xf32> -> vector<128x128xf32>
    %92 = arith.addf %86, %91 : vector<128x128xf32>
    %c0_76 = arith.constant 0 : index
    %c0_77 = arith.constant 0 : index
    %c1_78 = arith.constant 1 : index
    %c0_79 = arith.constant 0 : index
    %93 = vector.load %arg8[%c0_76, %c0_77, %c1_78, %c0_79] : memref<2x10x10x8xf32, #tpu.memory_space<vmem>>, vector<2x10x8x8xf32>
    %94 = vector.extract_strided_slice %93 {offsets = [0, 0, 0, 0], sizes = [2, 8, 8, 8], strides = [1, 1, 1, 1]} : vector<2x10x8x8xf32> to vector<2x8x8x8xf32>
    %95 = vector.shape_cast %94 : vector<2x8x8x8xf32> to vector<128x8xf32>
    %c1_80 = arith.constant 1 : index
    %c0_81 = arith.constant 0 : index
    %c0_82 = arith.constant 0 : index
    %96 = vector.load %arg4[%c1_80, %c0_81, %c0_82] : memref<9x8x128xf32, #tpu.memory_space<vmem>>, vector<1x8x128xf32>
    %97 = vector.shape_cast %96 : vector<1x8x128xf32> to vector<8x128xf32>
    %cst_83 = arith.constant dense<0.000000e+00> : vector<128x128xf32>
    %98 = tpu.matmul %95, %97, %cst_83 {dimension_numbers = #tpu.dot_dimension_numbers<[1], [0], [0], [1], [0, 0, 1, 1], [], []>} : vector<128x8xf32>, vector<8x128xf32>, vector<128x128xf32> -> vector<128x128xf32>
    %99 = arith.addf %92, %98 : vector<128x128xf32>
    %100 = vector.extract_strided_slice %93 {offsets = [0, 1, 0, 0], sizes = [2, 8, 8, 8], strides = [1, 1, 1, 1]} : vector<2x10x8x8xf32> to vector<2x8x8x8xf32>
    %101 = vector.shape_cast %100 : vector<2x8x8x8xf32> to vector<128x8xf32>
    %c4_84 = arith.constant 4 : index
    %c0_85 = arith.constant 0 : index
    %c0_86 = arith.constant 0 : index
    %102 = vector.load %arg4[%c4_84, %c0_85, %c0_86] : memref<9x8x128xf32, #tpu.memory_space<vmem>>, vector<1x8x128xf32>
    %103 = vector.shape_cast %102 : vector<1x8x128xf32> to vector<8x128xf32>
    %cst_87 = arith.constant dense<0.000000e+00> : vector<128x128xf32>
    %104 = tpu.matmul %101, %103, %cst_87 {dimension_numbers = #tpu.dot_dimension_numbers<[1], [0], [0], [1], [0, 0, 1, 1], [], []>} : vector<128x8xf32>, vector<8x128xf32>, vector<128x128xf32> -> vector<128x128xf32>
    %105 = arith.addf %99, %104 : vector<128x128xf32>
    %106 = vector.extract_strided_slice %93 {offsets = [0, 2, 0, 0], sizes = [2, 8, 8, 8], strides = [1, 1, 1, 1]} : vector<2x10x8x8xf32> to vector<2x8x8x8xf32>
    %107 = vector.shape_cast %106 : vector<2x8x8x8xf32> to vector<128x8xf32>
    %c7_88 = arith.constant 7 : index
    %c0_89 = arith.constant 0 : index
    %c0_90 = arith.constant 0 : index
    %108 = vector.load %arg4[%c7_88, %c0_89, %c0_90] : memref<9x8x128xf32, #tpu.memory_space<vmem>>, vector<1x8x128xf32>
    %109 = vector.shape_cast %108 : vector<1x8x128xf32> to vector<8x128xf32>
    %cst_91 = arith.constant dense<0.000000e+00> : vector<128x128xf32>
    %110 = tpu.matmul %107, %109, %cst_91 {dimension_numbers = #tpu.dot_dimension_numbers<[1], [0], [0], [1], [0, 0, 1, 1], [], []>} : vector<128x8xf32>, vector<8x128xf32>, vector<128x128xf32> -> vector<128x128xf32>
    %111 = arith.addf %105, %110 : vector<128x128xf32>
    %c0_92 = arith.constant 0 : index
    %c0_93 = arith.constant 0 : index
    %c2_94 = arith.constant 2 : index
    %c0_95 = arith.constant 0 : index
    %112 = vector.load %arg8[%c0_92, %c0_93, %c2_94, %c0_95] : memref<2x10x10x8xf32, #tpu.memory_space<vmem>>, vector<2x10x8x8xf32>
    %113 = vector.extract_strided_slice %112 {offsets = [0, 0, 0, 0], sizes = [2, 8, 8, 8], strides = [1, 1, 1, 1]} : vector<2x10x8x8xf32> to vector<2x8x8x8xf32>
    %114 = vector.shape_cast %113 : vector<2x8x8x8xf32> to vector<128x8xf32>
    %c2_96 = arith.constant 2 : index
    %c0_97 = arith.constant 0 : index
    %c0_98 = arith.constant 0 : index
    %115 = vector.load %arg4[%c2_96, %c0_97, %c0_98] : memref<9x8x128xf32, #tpu.memory_space<vmem>>, vector<1x8x128xf32>
    %116 = vector.shape_cast %115 : vector<1x8x128xf32> to vector<8x128xf32>
    %cst_99 = arith.constant dense<0.000000e+00> : vector<128x128xf32>
    %117 = tpu.matmul %114, %116, %cst_99 {dimension_numbers = #tpu.dot_dimension_numbers<[1], [0], [0], [1], [0, 0, 1, 1], [], []>} : vector<128x8xf32>, vector<8x128xf32>, vector<128x128xf32> -> vector<128x128xf32>
    %118 = arith.addf %111, %117 : vector<128x128xf32>
    %119 = vector.extract_strided_slice %112 {offsets = [0, 1, 0, 0], sizes = [2, 8, 8, 8], strides = [1, 1, 1, 1]} : vector<2x10x8x8xf32> to vector<2x8x8x8xf32>
    %120 = vector.shape_cast %119 : vector<2x8x8x8xf32> to vector<128x8xf32>
    %c5_100 = arith.constant 5 : index
    %c0_101 = arith.constant 0 : index
    %c0_102 = arith.constant 0 : index
    %121 = vector.load %arg4[%c5_100, %c0_101, %c0_102] : memref<9x8x128xf32, #tpu.memory_space<vmem>>, vector<1x8x128xf32>
    %122 = vector.shape_cast %121 : vector<1x8x128xf32> to vector<8x128xf32>
    %cst_103 = arith.constant dense<0.000000e+00> : vector<128x128xf32>
    %123 = tpu.matmul %120, %122, %cst_103 {dimension_numbers = #tpu.dot_dimension_numbers<[1], [0], [0], [1], [0, 0, 1, 1], [], []>} : vector<128x8xf32>, vector<8x128xf32>, vector<128x128xf32> -> vector<128x128xf32>
    %124 = arith.addf %118, %123 : vector<128x128xf32>
    %125 = vector.extract_strided_slice %112 {offsets = [0, 2, 0, 0], sizes = [2, 8, 8, 8], strides = [1, 1, 1, 1]} : vector<2x10x8x8xf32> to vector<2x8x8x8xf32>
    %126 = vector.shape_cast %125 : vector<2x8x8x8xf32> to vector<128x8xf32>
    %c8_104 = arith.constant 8 : index
    %c0_105 = arith.constant 0 : index
    %c0_106 = arith.constant 0 : index
    %127 = vector.load %arg4[%c8_104, %c0_105, %c0_106] : memref<9x8x128xf32, #tpu.memory_space<vmem>>, vector<1x8x128xf32>
    %128 = vector.shape_cast %127 : vector<1x8x128xf32> to vector<8x128xf32>
    %cst_107 = arith.constant dense<0.000000e+00> : vector<128x128xf32>
    %129 = tpu.matmul %126, %128, %cst_107 {dimension_numbers = #tpu.dot_dimension_numbers<[1], [0], [0], [1], [0, 0, 1, 1], [], []>} : vector<128x8xf32>, vector<8x128xf32>, vector<128x128xf32> -> vector<128x128xf32>
    %130 = arith.addf %124, %129 : vector<128x128xf32>
    %c0_108 = arith.constant 0 : index
    %c0_109 = arith.constant 0 : index
    %131 = vector.load %arg5[%c0_108, %c0_109] : memref<1x128xf32, #tpu.memory_space<vmem>>, vector<1x128xf32>
    %132 = vector.broadcast %131 : vector<1x128xf32> to vector<128x128xf32>
    %133 = arith.addf %130, %132 : vector<128x128xf32>
    %cst_110 = arith.constant 0.000000e+00 : f32
    %134 = vector.broadcast %cst_110 : f32 to vector<128x128xf32>
    %135 = arith.maximumf %133, %134 : vector<128x128xf32>
    %136 = vector.shape_cast %135 : vector<128x128xf32> to vector<1x2x8x8x128xf32>
    %c0_111 = arith.constant 0 : index
    %c0_112 = arith.constant 0 : index
    %c0_113 = arith.constant 0 : index
    %c0_114 = arith.constant 0 : index
    %c0_115 = arith.constant 0 : index
    %137 = vector.load %arg6[%c0_111, %c0_112, %c0_113, %c0_114, %c0_115] : memref<1x2x8x8x128xf32, #tpu.memory_space<vmem>>, vector<1x2x8x8x128xf32>
    tpu.vector_store %arg6[%c0_111, %c0_112, %c0_113, %c0_114, %c0_115], %136 {strides = array<i32>} : memref<1x2x8x8x128xf32, #tpu.memory_space<vmem>>, vector<1x2x8x8x128xf32>,
    return
  }
  func.func @transform_0(%arg0: i32) -> (i32, i32, i32, i32, i32) {
    %c0_i32 = arith.constant 0 : i32
    %c0_i32_0 = arith.constant 0 : i32
    %c0_i32_1 = arith.constant 0 : i32
    %c0_i32_2 = arith.constant 0 : i32
    %c0_i32_3 = arith.constant 0 : i32
    return %arg0, %c0_i32, %c0_i32_0, %c0_i32_1, %c0_i32_2 : i32, i32, i32, i32, i32
  }
  func.func @transform_1(%arg0: i32) -> (i32, i32, i32) {
    %c0_i32 = arith.constant 0 : i32
    %c0_i32_0 = arith.constant 0 : i32
    %c0_i32_1 = arith.constant 0 : i32
    %c0_i32_2 = arith.constant 0 : i32
    return %c0_i32, %c0_i32_0, %c0_i32_1 : i32, i32, i32
  }
  func.func @transform_2(%arg0: i32) -> (i32, i32) {
    %c0_i32 = arith.constant 0 : i32
    %c0_i32_0 = arith.constant 0 : i32
    %c0_i32_1 = arith.constant 0 : i32
    return %c0_i32, %c0_i32_0 : i32, i32
  }
  func.func @transform_3(%arg0: i32) -> (i32, i32, i32) {
    %c0_i32 = arith.constant 0 : i32
    %c0_i32_0 = arith.constant 0 : i32
    %c0_i32_1 = arith.constant 0 : i32
    %c0_i32_2 = arith.constant 0 : i32
    return %c0_i32, %c0_i32_0, %c0_i32_1 : i32, i32, i32
  }
  func.func @transform_4(%arg0: i32) -> (i32, i32) {
    %c0_i32 = arith.constant 0 : i32
    %c0_i32_0 = arith.constant 0 : i32
    %c0_i32_1 = arith.constant 0 : i32
    return %c0_i32, %c0_i32_0 : i32, i32
  }
  func.func @transform_5(%arg0: i32) -> (i32, i32, i32, i32, i32) {
    %c0_i32 = arith.constant 0 : i32
    %c0_i32_0 = arith.constant 0 : i32
    %c0_i32_1 = arith.constant 0 : i32
    %c0_i32_2 = arith.constant 0 : i32
    %c0_i32_3 = arith.constant 0 : i32
    return %arg0, %c0_i32, %c0_i32_0, %c0_i32_1, %c0_i32_2 : i32, i32, i32, i32, i32
  }
}

</mosaic_0001>

<bundles_post_ra>
// kernel: down_forward.1
= control target key start
LH: loop header
LB: loop body
LE: loop exit
PB: predicated region body
PF: predicated region fallthrough
CT: control target
= control target key end

     0   :  { %vm24_vm0 = vcmask 31744   ;;  %vm26_vm1 = vcmask 25600   ;;  %v5110_v3 = vmov 0.0   ;;  %s5111_s9 = smov 124   ;;  %vm326_vm2 = vcmask 1043456   ;;  %s6077_s0 = inlined_call_operand.vmem [shape: f32[2,8,2,8,8], index: 0, kind: input, shape index: {}]   ;;  %s6078_s1 = inlined_call_operand.vmem [shape: f32[9,4,8], index: 1, kind: input, shape index: {}]   ;;  %s6079_s3 = inlined_call_operand.vmem [shape: f32[9,8,128], index: 3, kind: input, shape index: {}]   ;;  %s6080_s2 = inlined_call_operand.vmem [shape: f32[1,8], index: 2, kind: input, shape index: {}]   ;;  %s6081_s4 = inlined_call_operand.vmem [shape: f32[1,128], index: 4, kind: input, shape index: {}]   ;;  %s6082_s5 = inlined_call_operand.vmem [shape: f32[1,2,8,8,128], index: 5, kind: output, shape index: {}]  }
   0x1   :  { %v108_v0 = vld [vmem:[%s6077_s0] sm:$0xff]  ;;  %v3747_v1 = vld [vmem:[%s6077_s0 + $0x8] sm:$0xff]  ;;  %28 = vst.msk [vmem:[#allocation2 + $0x10] sm:$0xff] %vm24_vm0, %v5110_v3  ;;  %25 = vst.msk [vmem:[#allocation2] sm:$0xff] %vm24_vm0, %v5110_v3  ;;  %vm66_vm3 = vcmask 64512   ;;  %vm68_vm4 = vcmask 58368  }
   0x2   :  { %v110_v2 = vld [vmem:[%s6077_s0 + $0x20] sm:$0xff]  ;;  %29 = vst.msk [vmem:[#allocation2 + $0x18] sm:$0x3] %vm26_vm1, %v5110_v3  ;;  %27 = vst.msk [vmem:[#allocation2 + $0x8] sm:$0x3] %vm26_vm1, %v5110_v3  ;;  %v5231_v4 = vmax.f32 %v108_v0, %v3747_v1  ;;  %v3749_v5 = vld [vmem:[%s6077_s0 + $0x28] sm:$0xff] }
   0x3   :  { %30 = vst.msk [vmem:[#allocation2 + $0x20] sm:$0xff] %vm24_vm0, %v5110_v3  ;;  %32 = vst.msk [vmem:[#allocation2 + $0x30] sm:$0xff] %vm24_vm0, %v5110_v3  ;;  %v109_v6 = vld [vmem:[%s6077_s0 + $0x10] sm:$0xff]  ;;  %v3748_v7 = vld [vmem:[%s6077_s0 + $0x18] sm:$0xff]  ;;  %v5242_v8 = vmax.f32 %v110_v2, %v3749_v5 }
   0x4   :  { %31 = vst.msk [vmem:[#allocation2 + $0x28] sm:$0x3] %vm26_vm1, %v5110_v3  ;;  %33 = vst.msk [vmem:[#allocation2 + $0x38] sm:$0x3] %vm26_vm1, %v5110_v3  ;;  %v111_v9 = vld [vmem:[%s6077_s0 + $0x30] sm:$0xff]  ;;  %v3750_v10 = vld [vmem:[%s6077_s0 + $0x38] sm:$0xff]  ;;  %173 = vrot.lane.b32.xlu0 %v5231_v4, %s5111_s9  ;;  %v5252_v11 = vmax.f32 %v109_v6, %v3748_v7 }
   0x5   :  { %34 = vst.msk [vmem:[#allocation2 + $0x40] sm:$0xff] %vm24_vm0, %v5110_v3  ;;  %36 = vst.msk [vmem:[#allocation2 + $0x50] sm:$0xff] %vm24_vm0, %v5110_v3  ;;  %177 = vrot.lane.b32.xlu1 %v5242_v8, %s5111_s9  ;;  %v5256_v12 = vmax.f32 %v111_v9, %v3750_v10  ;;  %v112_v13 = vld [vmem:[%s6077_s0 + $0x40] sm:$0xff]  ;;  %v3751_v14 = vld [vmem:[%s6077_s0 + $0x48] sm:$0xff] }
   0x6   :  { %35 = vst.msk [vmem:[#allocation2 + $0x48] sm:$0x3] %vm26_vm1, %v5110_v3  ;;  %37 = vst.msk [vmem:[#allocation2 + $0x58] sm:$0x3] %vm26_vm1, %v5110_v3  ;;  %v113_v15 = vld [vmem:[%s6077_s0 + $0x50] sm:$0xff]  ;;  %v3752_v16 = vld [vmem:[%s6077_s0 + $0x58] sm:$0xff]  ;;  %v5272_v17 = vmax.f32 %v112_v13, %v3751_v14 }
   0x7   :  { %38 = vst.msk [vmem:[#allocation2 + $0x60] sm:$0xff] %vm24_vm0, %v5110_v3  ;;  %40 = vst.msk [vmem:[#allocation2 + $0x70] sm:$0xff] %vm24_vm0, %v5110_v3  ;;  %v5276_v18 = vmax.f32 %v113_v15, %v3752_v16  ;;  %v114_v19 = vld [vmem:[%s6077_s0 + $0x60] sm:$0xff]  ;;  %v3753_v20 = vld [vmem:[%s6077_s0 + $0x68] sm:$0xff] }
   0x8   :  { %39 = vst.msk [vmem:[#allocation2 + $0x68] sm:$0x3] %vm26_vm1, %v5110_v3  ;;  %41 = vst.msk [vmem:[#allocation2 + $0x78] sm:$0x3] %vm26_vm1, %v5110_v3  ;;  %175 = vrot.lane.b32.xlu0 %v5252_v11, %s5111_s9  ;;  %v115_v21 = vld [vmem:[%s6077_s0 + $0x70] sm:$0xff]  ;;  %v3754_v22 = vld [vmem:[%s6077_s0 + $0x78] sm:$0xff]  ;;  %v5295_v24 = vmax.f32 %v114_v19, %v3753_v20 }
   0x9   :  { %42 = vst.msk [vmem:[#allocation2 + $0x80] sm:$0xff] %vm24_vm0, %v5110_v3  ;;  %44 = vst.msk [vmem:[#allocation2 + $0x90] sm:$0xff] %vm24_vm0, %v5110_v3  ;;  %179 = vrot.lane.b32.xlu1 %v5256_v12, %s5111_s9  ;;  %v3763_v23 = vld [vmem:[%s6078_s1 + $0xc] sm:$0xf]  ;;  %v5301_v25 = vld [vmem:[%s6078_s1] sm:$0xf]  ;;  %v5305_v26 = vmax.f32 %v115_v21, %v3754_v22 }
   0xa   :  { %43 = vst.msk [vmem:[#allocation2 + $0x88] sm:$0x3] %vm26_vm1, %v5110_v3  ;;  %45 = vst.msk [vmem:[#allocation2 + $0x98] sm:$0x3] %vm26_vm1, %v5110_v3  ;;  %4384 = vmatprep.subr.msk.mxu0 %vm326_vm2, %v3763_v23  ;;  %v116_v27 = vld [vmem:[%s6077_s0 + $0x80] sm:$0xff]  ;;  %v3755_v28 = vld [vmem:[%s6077_s0 + $0x88] sm:$0xff] }
   0xb   :  { %46 = vst.msk [vmem:[#allocation2 + $0xa0] sm:$0xff] %vm24_vm0, %v5110_v3  ;;  %48 = vst.msk [vmem:[#allocation2 + $0xb0] sm:$0xff] %vm24_vm0, %v5110_v3  ;;  %4385 = vmatpush3.msk.msra.mxu0 %vm326_vm2, %v3763_v23  ;;  %v117_v29 = vld [vmem:[%s6077_s0 + $0x90] sm:$0xff]  ;;  %v3756_v30 = vld [vmem:[%s6077_s0 + $0x98] sm:$0xff]  ;;  %v5324_v31 = vmax.f32 %v116_v27, %v3755_v28 }
   0xc   :  { %47 = vst.msk [vmem:[#allocation2 + $0xa8] sm:$0x3] %vm26_vm1, %v5110_v3  ;;  %49 = vst.msk [vmem:[#allocation2 + $0xb8] sm:$0x3] %vm26_vm1, %v5110_v3  ;;  %181 = vrot.lane.b32.xlu0 %v5272_v17, %s5111_s9  ;;  %4410 = vmatprep.subr.msk.mxu0 %vm326_vm2, %v5301_v25  ;;  %v5328_v32 = vmax.f32 %v117_v29, %v3756_v30  ;;  %v118_v33 = vld [vmem:[%s6077_s0 + $0xa0] sm:$0xff]  ;;  %v3757_v34 = vld [vmem:[%s6077_s0 + $0xa8] sm:$0xff] }
   0xd   :  { %50 = vst.msk [vmem:[#allocation2 + $0xc0] sm:$0xff] %vm24_vm0, %v5110_v3  ;;  %52 = vst.msk [vmem:[#allocation2 + $0xd0] sm:$0xff] %vm24_vm0, %v5110_v3  ;;  %183 = vrot.lane.b32.xlu1 %v5276_v18, %s5111_s9  ;;  %v119_v35 = vld [vmem:[%s6077_s0 + $0xb0] sm:$0xff]  ;;  %v3758_v36 = vld [vmem:[%s6077_s0 + $0xb8] sm:$0xff]  ;;  %v5344_v37 = vmax.f32 %v118_v33, %v3757_v34 }
   0xe   :  { %51 = vst.msk [vmem:[#allocation2 + $0xc8] sm:$0x3] %vm26_vm1, %v5110_v3  ;;  %53 = vst.msk [vmem:[#allocation2 + $0xd8] sm:$0x3] %vm26_vm1, %v5110_v3  ;;  %v5348_v38 = vmax.f32 %v119_v35, %v3758_v36  ;;  %v120_v39 = vld [vmem:[%s6077_s0 + $0xc0] sm:$0xff]  ;;  %v3759_v40 = vld [vmem:[%s6077_s0 + $0xc8] sm:$0xff] }
   0xf   :  { %54 = vst.msk [vmem:[#allocation2 + $0xe0] sm:$0xff] %vm24_vm0, %v5110_v3  ;;  %56 = vst.msk [vmem:[#allocation2 + $0xf0] sm:$0xff] %vm24_vm0, %v5110_v3  ;;  %v121_v41 = vld [vmem:[%s6077_s0 + $0xd0] sm:$0xff]  ;;  %v3760_v42 = vld [vmem:[%s6077_s0 + $0xd8] sm:$0xff]  ;;  %v5364_v43 = vmax.f32 %v120_v39, %v3759_v40 }
  0x10   :  { %55 = vst.msk [vmem:[#allocation2 + $0xe8] sm:$0x3] %vm26_vm1, %v5110_v3  ;;  %57 = vst.msk [vmem:[#allocation2 + $0xf8] sm:$0x3] %vm26_vm1, %v5110_v3  ;;  %185 = vrot.lane.b32.xlu0 %v5295_v24, %s5111_s9  ;;  %v5368_v44 = vmax.f32 %v121_v41, %v3760_v42  ;;  %v122_v45 = vld [vmem:[%s6077_s0 + $0xe0] sm:$0xff]  ;;  %v3761_v46 = vld [vmem:[%s6077_s0 + $0xe8] sm:$0xff] }
  0x11   :  { %58 = vst.msk [vmem:[#allocation2 + $0x100] sm:$0xff] %vm24_vm0, %v5110_v3  ;;  %60 = vst.msk [vmem:[#allocation2 + $0x110] sm:$0xff] %vm24_vm0, %v5110_v3  ;;  %187 = vrot.lane.b32.xlu1 %v5305_v26, %s5111_s9  ;;  %v123_v47 = vld [vmem:[%s6077_s0 + $0xf0] sm:$0xff]  ;;  %v3762_v48 = vld [vmem:[%s6077_s0 + $0xf8] sm:$0xff]  ;;  %v5384_v49 = vmax.f32 %v122_v45, %v3761_v46 }
  0x12   :  { %59 = vst.msk [vmem:[#allocation2 + $0x108] sm:$0x3] %vm26_vm1, %v5110_v3  ;;  %61 = vst.msk [vmem:[#allocation2 + $0x118] sm:$0x3] %vm26_vm1, %v5110_v3  ;;  %v5388_v50 = vmax.f32 %v123_v47, %v3762_v48  ;;  %v3798_v7 = vld [vmem:[%s6078_s1 + $0x18] sm:$0xf] }
  0x13   :  { %62 = vst.msk [vmem:[#allocation2 + $0x120] sm:$0xff] %vm24_vm0, %v5110_v3  ;;  %64 = vst.msk [vmem:[#allocation2 + $0x130] sm:$0xff] %vm24_vm0, %v5110_v3  ;;  %v265_v39 = vld [vmem:[#allocation2 + $0xa0] sm:$0xff]  ;;  %v3834_v40 = vld [vmem:[%s6078_s1 + $0x10] sm:$0xf] }
  0x14   :  { %63 = vst.msk [vmem:[#allocation2 + $0x128] sm:$0x3] %vm26_vm1, %v5110_v3  ;;  %65 = vst.msk [vmem:[#allocation2 + $0x138] sm:$0x3] %vm26_vm1, %v5110_v3  ;;  %189 = vrot.lane.b32.xlu0 %v5324_v31, %s5111_s9  ;;  %v264_v41 = vld [vmem:[#allocation2 + $0x90] sm:$0xff] }
  0x15   :  { %191 = vrot.lane.b32.xlu1 %v5328_v32, %s5111_s9  ;;  %v3852_v45 = vld [vmem:[%s6078_s1 + $0x1c] sm:$0xf]  ;;  %72 = vst.msk [vmem:[#allocation3 + $0x20] sm:$0xff] %vm66_vm3, %v5110_v3  ;;  %67 = vst.msk [vmem:[#allocation3] sm:$0xff] %vm66_vm3, %v5110_v3 }
  0x16   :  { %73 = vst.msk [vmem:[#allocation3 + $0x28] sm:$0x3] %vm68_vm4, %v5110_v3  ;;  %69 = vst.msk [vmem:[#allocation3 + $0x8] sm:$0x3] %vm68_vm4, %v5110_v3 }
  0x17   :  { %70 = vst.msk [vmem:[#allocation3 + $0x10] sm:$0xff] %vm66_vm3, %v5110_v3  ;;  %74 = vst.msk [vmem:[#allocation3 + $0x30] sm:$0xff] %vm66_vm3, %v5110_v3 }
  0x18   :  { %193 = vrot.lane.b32.xlu0 %v5344_v37, %s5111_s9  ;;  %71 = vst.msk [vmem:[#allocation3 + $0x18] sm:$0x3] %vm68_vm4, %v5110_v3  ;;  %75 = vst.msk [vmem:[#allocation3 + $0x38] sm:$0x3] %vm68_vm4, %v5110_v3 }
  0x19   :  { %195 = vrot.lane.b32.xlu1 %v5348_v38, %s5111_s9  ;;  %76 = vst.msk [vmem:[#allocation3 + $0x40] sm:$0xff] %vm66_vm3, %v5110_v3  ;;  %78 = vst.msk [vmem:[#allocation3 + $0x50] sm:$0xff] %vm66_vm3, %v5110_v3 }
  0x1a   :  { %v274_v42 = vld [vmem:[#allocation2 + $0x130] sm:$0xff]  ;;  %77 = vst.msk [vmem:[#allocation3 + $0x48] sm:$0x3] %vm68_vm4, %v5110_v3  ;;  %79 = vst.msk [vmem:[#allocation3 + $0x58] sm:$0x3] %vm68_vm4, %v5110_v3 }
  0x1b   :  { %80 = vst.msk [vmem:[#allocation3 + $0x60] sm:$0xff] %vm66_vm3, %v5110_v3  ;;  %82 = vst.msk [vmem:[#allocation3 + $0x70] sm:$0xff] %vm66_vm3, %v5110_v3 }
  0x1c   :  { %197 = vrot.lane.b32.xlu0 %v5364_v43, %s5111_s9  ;;  %81 = vst.msk [vmem:[#allocation3 + $0x68] sm:$0x3] %vm68_vm4, %v5110_v3  ;;  %83 = vst.msk [vmem:[#allocation3 + $0x78] sm:$0x3] %vm68_vm4, %v5110_v3 }
  0x1d   :  { %199 = vrot.lane.b32.xlu1 %v5368_v44, %s5111_s9  ;;  %84 = vst.msk [vmem:[#allocation3 + $0x80] sm:$0xff] %vm66_vm3, %v5110_v3  ;;  %86 = vst.msk [vmem:[#allocation3 + $0x90] sm:$0xff] %vm66_vm3, %v5110_v3 }
  0x1e   :  { %85 = vst.msk [vmem:[#allocation3 + $0x88] sm:$0x3] %vm68_vm4, %v5110_v3  ;;  %87 = vst.msk [vmem:[#allocation3 + $0x98] sm:$0x3] %vm68_vm4, %v5110_v3 }
  0x1f   :  { %88 = vst.msk [vmem:[#allocation3 + $0xa0] sm:$0xff] %vm66_vm3, %v5110_v3  ;;  %90 = vst.msk [vmem:[#allocation3 + $0xb0] sm:$0xff] %vm66_vm3, %v5110_v3 }
  0x20   :  { %201 = vrot.lane.b32.xlu0 %v5384_v49, %s5111_s9  ;;  %89 = vst.msk [vmem:[#allocation3 + $0xa8] sm:$0x3] %vm68_vm4, %v5110_v3  ;;  %91 = vst.msk [vmem:[#allocation3 + $0xb8] sm:$0x3] %vm68_vm4, %v5110_v3 }
  0x21   :  { %203 = vrot.lane.b32.xlu1 %v5388_v50, %s5111_s9  ;;  %92 = vst.msk [vmem:[#allocation3 + $0xc0] sm:$0xff] %vm66_vm3, %v5110_v3  ;;  %94 = vst.msk [vmem:[#allocation3 + $0xd0] sm:$0xff] %vm66_vm3, %v5110_v3 }
  0x22   :  { %93 = vst.msk [vmem:[#allocation3 + $0xc8] sm:$0x3] %vm68_vm4, %v5110_v3  ;;  %95 = vst.msk [vmem:[#allocation3 + $0xd8] sm:$0x3] %vm68_vm4, %v5110_v3 }
  0x23   :  { %96 = vst.msk [vmem:[#allocation3 + $0xe0] sm:$0xff] %vm66_vm3, %v5110_v3  ;;  %98 = vst.msk [vmem:[#allocation3 + $0xf0] sm:$0xff] %vm66_vm3, %v5110_v3 }
  0x24   :  { %97 = vst.msk [vmem:[#allocation3 + $0xe8] sm:$0x3] %vm68_vm4, %v5110_v3  ;;  %99 = vst.msk [vmem:[#allocation3 + $0xf8] sm:$0x3] %vm68_vm4, %v5110_v3 }
  0x25   :  { %100 = vst.msk [vmem:[#allocation3 + $0x100] sm:$0xff] %vm66_vm3, %v5110_v3  ;;  %102 = vst.msk [vmem:[#allocation3 + $0x110] sm:$0xff] %vm66_vm3, %v5110_v3 }
  0x26   :  { %101 = vst.msk [vmem:[#allocation3 + $0x108] sm:$0x3] %vm68_vm4, %v5110_v3  ;;  %103 = vst.msk [vmem:[#allocation3 + $0x118] sm:$0x3] %vm68_vm4, %v5110_v3 }
  0x27   :  { %104 = vst.msk [vmem:[#allocation3 + $0x120] sm:$0xff] %vm66_vm3, %v5110_v3  ;;  %106 = vst.msk [vmem:[#allocation3 + $0x130] sm:$0xff] %vm66_vm3, %v5110_v3 }
  0x28   :  { %105 = vst.msk [vmem:[#allocation3 + $0x128] sm:$0x3] %vm68_vm4, %v5110_v3  ;;  %107 = vst.msk [vmem:[#allocation3 + $0x138] sm:$0x3] %vm68_vm4, %v5110_v3  ;;  %v810_v3 = vld [vmem:[#allocation2 + $0x91] sm:$0xff] }
  0x76   :  { %v174_v51 = vpop.permute.xlu0 %173 }
  0x77   :  { %v221_v52 = vmax.f32 %v5231_v4, %v174_v51  ;;  %v178_v53 = vpop.permute.xlu1 %177  ;;  %v811_v51 = vld [vmem:[#allocation2 + $0xa1] sm:$0xff] }
  0x78   :  { %v223_v54 = vmax.f32 %v5242_v8, %v178_v53 }
  0x79   :  { %239 = vst.msk [vmem:[#allocation2 + $0x11] sm:$0xff] %vm24_vm0, %v221_v52 }
  0x7a   :  { %241 = vst.msk [vmem:[#allocation2 + $0x31] sm:$0xff] %vm24_vm0, %v223_v54  ;;  %v176_v55 = vpop.permute.xlu0 %175 }
  0x7b   :  { %v222_v56 = vmax.f32 %v5252_v11, %v176_v55  ;;  %v180_v57 = vpop.permute.xlu1 %179 }
  0x7c   :  { %v224_v58 = vmax.f32 %v5256_v12, %v180_v57 }
  0x7d   :  { %240 = vst.msk [vmem:[#allocation2 + $0x21] sm:$0xff] %vm24_vm0, %v222_v56 }
  0x7e   :  { %242 = vst.msk [vmem:[#allocation2 + $0x41] sm:$0xff] %vm24_vm0, %v224_v58  ;;  %v182_v59 = vpop.permute.xlu0 %181 }
  0x7f   :  { %v225_v60 = vmax.f32 %v5272_v17, %v182_v59  ;;  %v184_v61 = vpop.permute.xlu1 %183 }
  0x80   :  { %v5403_v62 = vld [vmem:[#allocation2 + $0x10] sm:$0xff]  ;;  %v226_v63 = vmax.f32 %v5276_v18, %v184_v61 }
  0x81   :  { %4386 = vmatprep.mubr.msk.f32.mxu0 %vm24_vm0, %v5403_v62  ;;  %243 = vst.msk [vmem:[#allocation2 + $0x51] sm:$0xff] %vm24_vm0, %v225_v60  ;;  %v5411_v4 = vld [vmem:[#allocation2 + $0x30] sm:$0xff]  ;;  %v5582_v60 = vld [vmem:[%s6078_s1 + $0x8] sm:$0xf] }
  0x82   :  { %244 = vst.msk [vmem:[#allocation2 + $0x61] sm:$0xff] %vm24_vm0, %v226_v63  ;;  %v186_v0 = vpop.permute.xlu0 %185  ;;  %v5532_v47 = vld [vmem:[#allocation2 + $0x31] sm:$0xff] }
  0x83   :  { %v227_v1 = vmax.f32 %v5295_v24, %v186_v0  ;;  %v188_v2 = vpop.permute.xlu1 %187  ;;  %v3888_v63 = vld [vmem:[%s6078_s1 + $0x14] sm:$0xf] }
  0x84   :  { %v5413_v5 = vld [vmem:[#allocation2 + $0x20] sm:$0xff]  ;;  %v228_v6 = vmax.f32 %v5305_v26, %v188_v2  ;;  %v820_v0 = vld [vmem:[#allocation2 + $0x131] sm:$0xff] }
  0x85   :  { %4387 = vmatmul.mubr.msk.f32.vlgmr.msra.gmra.mrb[0].mxu0 %vm24_vm0, %v5413_v5  ;;  %245 = vst.msk [vmem:[#allocation2 + $0x71] sm:$0xff] %vm24_vm0, %v227_v1  ;;  %v5427_v8 = vld [vmem:[#allocation2 + $0x40] sm:$0xff]  ;;  %v1380_v2 = vld [vmem:[#allocation2 + $0x12] sm:$0xff] }
  0x86   :  { %4411 = vmatpush3.msk.msra.mxu0 %vm326_vm2, %v5301_v25  ;;  %246 = vst.msk [vmem:[#allocation2 + $0x81] sm:$0xff] %vm24_vm0, %v228_v6  ;;  %4389 = vmatprep.mubr.msk.f32.mxu0 %vm24_vm0, %v5411_v4  ;;  %v190_v9 = vpop.permute.xlu0 %189  ;;  %v803_v46 = vld [vmem:[#allocation2 + $0x21] sm:$0xff]  ;;  %v1382_v6 = vld [vmem:[#allocation2 + $0x32] sm:$0xff] }
  0x87   :  { %v229_v10 = vmax.f32 %v5324_v31, %v190_v9  ;;  %v192_v11 = vpop.permute.xlu1 %191  ;;  %4436 = vmatprep.subr.msk.mxu0 %vm326_vm2, %v3798_v7  ;;  %v5536_v48 = vld [vmem:[#allocation2 + $0x41] sm:$0xff] }
  0x88   :  { %v230_v12 = vmax.f32 %v5328_v32, %v192_v11  ;;  %v5432_v13 = vld [vmem:[#allocation2 + $0x50] sm:$0xff]  ;;  %v1379_v1 = vld [vmem:[#allocation2 + $0x2] sm:$0xff] }
  0x89   :  { %4390 = vmatmul.mubr.msk.f32.gmra.mrb[2].mxu0 %vm24_vm0, %v5427_v8  ;;  %247 = vst.msk [vmem:[#allocation2 + $0xb1] sm:$0xff] %vm24_vm0, %v229_v10  ;;  %v5440_v14 = vld [vmem:[#allocation2 + $0x60] sm:$0xff] }
  0x8a   :  { %248 = vst.msk [vmem:[#allocation2 + $0xc1] sm:$0xff] %vm24_vm0, %v230_v12  ;;  %4392 = vmatprep.mubr.msk.f32.mxu0 %vm24_vm0, %v5432_v13  ;;  %v194_v15 = vpop.permute.xlu0 %193  ;;  %v1385_v9 = vld [vmem:[#allocation2 + $0x62] sm:$0xff] }
  0x8b   :  { %v231_v16 = vmax.f32 %v5344_v37, %v194_v15  ;;  %v196_v17 = vpop.permute.xlu1 %195  ;;  %v255_v37 = vld [vmem:[#allocation2] sm:$0xff] }
  0x8c   :  { %v232_v18 = vmax.f32 %v5348_v38, %v196_v17  ;;  %v5444_v19 = vld [vmem:[#allocation2 + $0x70] sm:$0xff]  ;;  %v3816_v38 = vld [vmem:[%s6078_s1 + $0x4] sm:$0xf] }
  0x8d   :  { %4393 = vmatmul.mubr.msk.f32.gmra.mrb[4].mxu0 %vm24_vm0, %v5440_v14  ;;  %249 = vst.msk [vmem:[#allocation2 + $0xd1] sm:$0xff] %vm24_vm0, %v231_v16  ;;  %v263_v20 = vld [vmem:[#allocation2 + $0x80] sm:$0xff]  ;;  %v5548_v52 = vld [vmem:[#allocation2 + $0x71] sm:$0xff] }
  0x8e   :  { %250 = vst.msk [vmem:[#allocation2 + $0xe1] sm:$0xff] %vm24_vm0, %v232_v18  ;;  %4395 = vmatprep.mubr.msk.f32.mxu0 %vm24_vm0, %v5444_v19  ;;  %v198_v21 = vpop.permute.xlu0 %197  ;;  %v809_v61 = vld [vmem:[#allocation2 + $0x81] sm:$0xff]  ;;  %v1386_v11 = vld [vmem:[#allocation2 + $0x72] sm:$0xff] }
  0x8f   :  { %v233_v22 = vmax.f32 %v5364_v43, %v198_v21  ;;  %v200_v23 = vpop.permute.xlu1 %199  ;;  %v801_v43 = vld [vmem:[#allocation2 + $0x1] sm:$0xff]  ;;  %v1388_v21 = vld [vmem:[#allocation2 + $0x92] sm:$0xff] }
  0x90   :  { %v234_v24 = vmax.f32 %v5368_v44, %v200_v23  ;;  %v266_v25 = vld [vmem:[#allocation2 + $0xb0] sm:$0xff]  ;;  %v1389_v10 = vld [vmem:[#allocation2 + $0xa2] sm:$0xff]  ;;  %v3925_v23 = vld [vmem:[%s6079_s3 + $0x18] sm:$0xff] }
  0x91   :  { %4396 = vmatmul.mubr.msk.f32.gmra.mrb[6].mxu0 %vm24_vm0, %v263_v20  ;;  %251 = vst.msk [vmem:[#allocation2 + $0xf1] sm:$0xff] %vm24_vm0, %v233_v22  ;;  %v267_v26 = vld [vmem:[#allocation2 + $0xc0] sm:$0xff]  ;;  %v802_v44 = vld [vmem:[#allocation2 + $0x11] sm:$0xff]  ;;  %4618 = vmatprep.subr.mxu1 %v3925_v23 }
  0x92   :  { %252 = vst.msk [vmem:[#allocation2 + $0x101] sm:$0xff] %vm24_vm0, %v234_v24  ;;  %4398 = vmatprep.mubr.msk.f32.mxu0 %vm24_vm0, %v266_v25  ;;  %v202_v27 = vpop.permute.xlu0 %201  ;;  %v812_v53 = vld [vmem:[#allocation2 + $0xb1] sm:$0xff]  ;;  %v5554_v54 = vld [vmem:[#allocation2 + $0xc1] sm:$0xff]  ;;  %4619 = vmatpush3.msra.mxu1 %v3925_v23 }
  0x93   :  { %v235_v28 = vmax.f32 %v5384_v49, %v202_v27  ;;  %v204_v29 = vpop.permute.xlu1 %203  ;;  %v5540_v49 = vld [vmem:[#allocation2 + $0x51] sm:$0xff]  ;;  %v2034_v24 = vld [vmem:[%s6079_s3] sm:$0xff] }
  0x94   :  { %v236_v30 = vmax.f32 %v5388_v50, %v204_v29  ;;  %v268_v31 = vld [vmem:[#allocation2 + $0xd0] sm:$0xff]  ;;  %v5544_v50 = vld [vmem:[#allocation2 + $0x61] sm:$0xff]  ;;  %4644 = vmatprep.subr.mxu1 %v2034_v24 }
  0x95   :  { %4399 = vmatmul.mubr.msk.f32.gmra.mrb[8].mxu0 %vm24_vm0, %v267_v26  ;;  %253 = vst.msk [vmem:[#allocation2 + $0x111] sm:$0xff] %vm24_vm0, %v235_v28  ;;  %v269_v32 = vld [vmem:[#allocation2 + $0xe0] sm:$0xff]  ;;  %v5558_v55 = vld [vmem:[#allocation2 + $0xd1] sm:$0xff] }
  0x96   :  { %254 = vst.msk [vmem:[#allocation2 + $0x121] sm:$0xff] %vm24_vm0, %v236_v30  ;;  %4401 = vmatprep.mubr.msk.f32.mxu0 %vm24_vm0, %v268_v31  ;;  %v5562_v56 = vld [vmem:[#allocation2 + $0xe1] sm:$0xff]  ;;  %v1390_v12 = vld [vmem:[#allocation2 + $0xb2] sm:$0xff] }
  0x97   :  { %v1393_v15 = vld [vmem:[#allocation2 + $0xe2] sm:$0xff]  ;;  %v1398_v22 = vld [vmem:[#allocation2 + $0x132] sm:$0xff] }
  0x98   :  { %v270_v33 = vld [vmem:[#allocation2 + $0xf0] sm:$0xff] }
  0x99   :  { %4402 = vmatmul.mubr.msk.f32.gmra.mrb[10].mxu0 %vm24_vm0, %v269_v32  ;;  %v271_v34 = vld [vmem:[#allocation2 + $0x100] sm:$0xff]  ;;  %v5566_v57 = vld [vmem:[#allocation2 + $0xf1] sm:$0xff] }
  0x9a   :  { %4404 = vmatprep.mubr.msk.f32.mxu0 %vm24_vm0, %v270_v33  ;;  %v5570_v58 = vld [vmem:[#allocation2 + $0x101] sm:$0xff]  ;;  %v1394_v16 = vld [vmem:[#allocation2 + $0xf2] sm:$0xff] }
  0x9b   :  { %v1395_v17 = vld [vmem:[#allocation2 + $0x102] sm:$0xff] }
  0x9c   :  { %v272_v35 = vld [vmem:[#allocation2 + $0x110] sm:$0xff] }
  0x9d   :  { %4405 = vmatmul.mubr.msk.f32.gmra.mrb[12].mxu0 %vm24_vm0, %v271_v34  ;;  %v273_v36 = vld [vmem:[#allocation2 + $0x120] sm:$0xff]  ;;  %v5574_v59 = vld [vmem:[#allocation2 + $0x111] sm:$0xff] }
  0x9e   :  { %4407 = vmatprep.mubr.msk.f32.mxu0 %vm24_vm0, %v272_v35  ;;  %v1396_v18 = vld [vmem:[#allocation2 + $0x112] sm:$0xff] }
  0xa1   :  { %4408 = vmatmul.mubr.msk.f32.gmra.mrb[14].mxu0 %vm24_vm0, %v273_v36 }
  0xa2   :  { %4412 = vmatprep.mubr.msk.f32.mxu0 %vm24_vm0, %v255_v37 }
  0xa5   :  { %4413 = vmatmul.mubr.msk.f32.vlgmr.msra.gmra.mrb[0].mxu0 %vm24_vm0, %v5403_v62  ;;  %v819_v62 = vld [vmem:[#allocation2 + $0x121] sm:$0xff] }
  0xa6   :  { %4437 = vmatpush3.msk.msra.mxu0 %vm326_vm2, %v3798_v7  ;;  %4415 = vmatprep.mubr.msk.f32.mxu0 %vm24_vm0, %v5413_v5  ;;  %v1383_v7 = vld [vmem:[#allocation2 + $0x42] sm:$0xff] }
  0xa7   :  { %4462 = vmatprep.subr.msk.mxu0 %vm326_vm2, %v3816_v38 }
  0xa9   :  { %4416 = vmatmul.mubr.msk.f32.gmra.mrb[2].mxu0 %vm24_vm0, %v5411_v4 }
  0xaa   :  { %4418 = vmatprep.mubr.msk.f32.mxu0 %vm24_vm0, %v5427_v8 }
  0xad   :  { %4419 = vmatmul.mubr.msk.f32.gmra.mrb[4].mxu0 %vm24_vm0, %v5432_v13 }
  0xae   :  { %4421 = vmatprep.mubr.msk.f32.mxu0 %vm24_vm0, %v5440_v14 }
  0xb1   :  { %4422 = vmatmul.mubr.msk.f32.gmra.mrb[6].mxu0 %vm24_vm0, %v5444_v19 }
  0xb2   :  { %4424 = vmatprep.mubr.msk.f32.mxu0 %vm24_vm0, %v265_v39 }
  0xb5   :  { %4425 = vmatmul.mubr.msk.f32.gmra.mrb[8].mxu0 %vm24_vm0, %v266_v25  ;;  %v5789_v25 = vld [vmem:[%s6080_s2] ss:$0 sm:$0xff] }
  0xb6   :  { %4427 = vmatprep.mubr.msk.f32.mxu0 %vm24_vm0, %v267_v26 }
  0xb9   :  { %4428 = vmatmul.mubr.msk.f32.gmra.mrb[10].mxu0 %vm24_vm0, %v268_v31 }
  0xba   :  { %4430 = vmatprep.mubr.msk.f32.mxu0 %vm24_vm0, %v269_v32 }
  0xbd   :  { %4431 = vmatmul.mubr.msk.f32.gmra.mrb[12].mxu0 %vm24_vm0, %v270_v33 }
  0xbe   :  { %4433 = vmatprep.mubr.msk.f32.mxu0 %vm24_vm0, %v271_v34 }
  0xc1   :  { %4434 = vmatmul.mubr.msk.f32.gmra.mrb[14].mxu0 %vm24_vm0, %v272_v35 }
  0xc2   :  { %4438 = vmatprep.mubr.msk.f32.mxu0 %vm24_vm0, %v5413_v5  ;;  %v1381_v5 = vld [vmem:[#allocation2 + $0x22] sm:$0xff] }
  0xc5   :  { %4439 = vmatmul.mubr.msk.f32.vlgmr.msra.gmra.mrb[0].mxu0 %vm24_vm0, %v5411_v4  ;;  %v3906_v4 = vld [vmem:[%s6078_s1 + $0x20] sm:$0xf] }
  0xc6   :  { %4463 = vmatpush3.msk.msra.mxu0 %vm326_vm2, %v3816_v38  ;;  %4441 = vmatprep.mubr.msk.f32.mxu0 %vm24_vm0, %v5427_v8  ;;  %v1384_v8 = vld [vmem:[#allocation2 + $0x52] sm:$0xff] }
  0xc7   :  { %4488 = vmatprep.subr.msk.mxu0 %vm326_vm2, %v3834_v40 }
  0xc9   :  { %4442 = vmatmul.mubr.msk.f32.gmra.mrb[2].mxu0 %vm24_vm0, %v5432_v13  ;;  %v1391_v13 = vld [vmem:[#allocation2 + $0xc2] sm:$0xff] }
  0xca   :  { %4444 = vmatprep.mubr.msk.f32.mxu0 %vm24_vm0, %v5440_v14  ;;  %v1392_v14 = vld [vmem:[#allocation2 + $0xd2] sm:$0xff] }
  0xcd   :  { %4445 = vmatmul.mubr.msk.f32.gmra.mrb[4].mxu0 %vm24_vm0, %v5444_v19  ;;  %v1387_v19 = vld [vmem:[#allocation2 + $0x82] sm:$0xff] }
  0xce   :  { %4447 = vmatprep.mubr.msk.f32.mxu0 %vm24_vm0, %v263_v20  ;;  %v1397_v20 = vld [vmem:[#allocation2 + $0x122] sm:$0xff] }
  0xd1   :  { %4448 = vmatmul.mubr.msk.f32.gmra.mrb[6].mxu0 %vm24_vm0, %v264_v41 }
  0xd2   :  { %4450 = vmatprep.mubr.msk.f32.mxu0 %vm24_vm0, %v267_v26 }
  0xd5   :  { %4451 = vmatmul.mubr.msk.f32.gmra.mrb[8].mxu0 %vm24_vm0, %v268_v31 }
  0xd6   :  { %4453 = vmatprep.mubr.msk.f32.mxu0 %vm24_vm0, %v269_v32 }
  0xd9   :  { %4454 = vmatmul.mubr.msk.f32.gmra.mrb[10].mxu0 %vm24_vm0, %v270_v33 }
  0xda   :  { %4456 = vmatprep.mubr.msk.f32.mxu0 %vm24_vm0, %v271_v34 }
  0xdd   :  { %4457 = vmatmul.mubr.msk.f32.gmra.mrb[12].mxu0 %vm24_vm0, %v272_v35 }
  0xde   :  { %4459 = vmatprep.mubr.msk.f32.mxu0 %vm24_vm0, %v273_v36 }
  0xe1   :  { %4460 = vmatmul.mubr.msk.f32.gmra.mrb[14].mxu0 %vm24_vm0, %v274_v42 }
  0xe2   :  { %4464 = vmatprep.mubr.msk.f32.mxu0 %vm24_vm0, %v801_v43 }
  0xe5   :  { %4465 = vmatmul.mubr.msk.f32.vlgmr.msra.gmra.mrb[0].mxu0 %vm24_vm0, %v802_v44 }
  0xe6   :  { %4489 = vmatpush3.msk.msra.mxu0 %vm326_vm2, %v3834_v40  ;;  %4467 = vmatprep.mubr.msk.f32.mxu0 %vm24_vm0, %v803_v46 }
  0xe7   :  { %4514 = vmatprep.subr.msk.mxu0 %vm326_vm2, %v3852_v45 }
  0xe9   :  { %4468 = vmatmul.mubr.msk.f32.gmra.mrb[2].mxu0 %vm24_vm0, %v5532_v47 }
  0xea   :  { %4470 = vmatprep.mubr.msk.f32.mxu0 %vm24_vm0, %v5536_v48 }
  0xed   :  { %4471 = vmatmul.mubr.msk.f32.gmra.mrb[4].mxu0 %vm24_vm0, %v5540_v49 }
  0xee   :  { %4473 = vmatprep.mubr.msk.f32.mxu0 %vm24_vm0, %v5544_v50 }
  0xf1   :  { %4474 = vmatmul.mubr.msk.f32.gmra.mrb[6].mxu0 %vm24_vm0, %v5548_v52 }
  0xf2   :  { %4476 = vmatprep.mubr.msk.f32.mxu0 %vm24_vm0, %v811_v51 }
  0xf5   :  { %4477 = vmatmul.mubr.msk.f32.gmra.mrb[8].mxu0 %vm24_vm0, %v812_v53 }
  0xf6   :  { %4479 = vmatprep.mubr.msk.f32.mxu0 %vm24_vm0, %v5554_v54 }
  0xf9   :  { %4480 = vmatmul.mubr.msk.f32.gmra.mrb[10].mxu0 %vm24_vm0, %v5558_v55 }
  0xfa   :  { %4482 = vmatprep.mubr.msk.f32.mxu0 %vm24_vm0, %v5562_v56 }
  0xfd   :  { %4483 = vmatmul.mubr.msk.f32.gmra.mrb[12].mxu0 %vm24_vm0, %v5566_v57 }
  0xfe   :  { %4485 = vmatprep.mubr.msk.f32.mxu0 %vm24_vm0, %v5570_v58 }
 0x101   :  { %4486 = vmatmul.mubr.msk.f32.gmra.mrb[14].mxu0 %vm24_vm0, %v5574_v59 }
 0x102   :  { %4490 = vmatprep.mubr.msk.f32.mxu0 %vm24_vm0, %v802_v44 }
 0x105   :  { %4491 = vmatmul.mubr.msk.f32.vlgmr.msra.gmra.mrb[0].mxu0 %vm24_vm0, %v803_v46 }
 0x106   :  { %4515 = vmatpush3.msk.msra.mxu0 %vm326_vm2, %v3852_v45  ;;  %4493 = vmatprep.mubr.msk.f32.mxu0 %vm24_vm0, %v5532_v47 }
 0x107   :  { %4540 = vmatprep.subr.msk.mxu0 %vm326_vm2, %v5582_v60 }
 0x109   :  { %4494 = vmatmul.mubr.msk.f32.gmra.mrb[2].mxu0 %vm24_vm0, %v5536_v48 }
 0x10a   :  { %4496 = vmatprep.mubr.msk.f32.mxu0 %vm24_vm0, %v5540_v49 }
 0x10d   :  { %4497 = vmatmul.mubr.msk.f32.gmra.mrb[4].mxu0 %vm24_vm0, %v5544_v50 }
 0x10e   :  { %4499 = vmatprep.mubr.msk.f32.mxu0 %vm24_vm0, %v5548_v52 }
 0x111   :  { %4500 = vmatmul.mubr.msk.f32.gmra.mrb[6].mxu0 %vm24_vm0, %v809_v61 }
 0x112   :  { %4502 = vmatprep.mubr.msk.f32.mxu0 %vm24_vm0, %v812_v53 }
 0x115   :  { %4503 = vmatmul.mubr.msk.f32.gmra.mrb[8].mxu0 %vm24_vm0, %v5554_v54 }
 0x116   :  { %4505 = vmatprep.mubr.msk.f32.mxu0 %vm24_vm0, %v5558_v55 }
 0x119   :  { %4506 = vmatmul.mubr.msk.f32.gmra.mrb[10].mxu0 %vm24_vm0, %v5562_v56 }
 0x11a   :  { %4508 = vmatprep.mubr.msk.f32.mxu0 %vm24_vm0, %v5566_v57 }
 0x11d   :  { %4509 = vmatmul.mubr.msk.f32.gmra.mrb[12].mxu0 %vm24_vm0, %v5570_v58 }
 0x11e   :  { %4511 = vmatprep.mubr.msk.f32.mxu0 %vm24_vm0, %v5574_v59 }
 0x121   :  { %4512 = vmatmul.mubr.msk.f32.gmra.mrb[14].mxu0 %vm24_vm0, %v819_v62 }
 0x122   :  { %4516 = vmatprep.mubr.msk.f32.mxu0 %vm24_vm0, %v803_v46 }
 0x125   :  { %4517 = vmatmul.mubr.msk.f32.vlgmr.msra.gmra.mrb[0].mxu0 %vm24_vm0, %v5532_v47 }
 0x126   :  { %4541 = vmatpush3.msk.msra.mxu0 %vm326_vm2, %v5582_v60  ;;  %4519 = vmatprep.mubr.msk.f32.mxu0 %vm24_vm0, %v5536_v48 }
 0x127   :  { %4566 = vmatprep.subr.msk.mxu0 %vm326_vm2, %v3888_v63 }
 0x129   :  { %4520 = vmatmul.mubr.msk.f32.gmra.mrb[2].mxu0 %vm24_vm0, %v5540_v49 }
 0x12a   :  { %4522 = vmatprep.mubr.msk.f32.mxu0 %vm24_vm0, %v5544_v50  ;;  %v5814_v50 = vld [vmem:[%s6079_s3 + $0x30] sm:$0xff] }
 0x12d   :  { %4523 = vmatmul.mubr.msk.f32.gmra.mrb[4].mxu0 %vm24_vm0, %v5548_v52 }
 0x12e   :  { %4525 = vmatprep.mubr.msk.f32.mxu0 %vm24_vm0, %v809_v61 }
 0x131   :  { %4526 = vmatmul.mubr.msk.f32.gmra.mrb[6].mxu0 %vm24_vm0, %v810_v3 }
 0x132   :  { %4528 = vmatprep.mubr.msk.f32.mxu0 %vm24_vm0, %v5554_v54 }
 0x135   :  { %4529 = vmatmul.mubr.msk.f32.gmra.mrb[8].mxu0 %vm24_vm0, %v5558_v55 }
 0x136   :  { %4531 = vmatprep.mubr.msk.f32.mxu0 %vm24_vm0, %v5562_v56 }
 0x139   :  { %4532 = vmatmul.mubr.msk.f32.gmra.mrb[10].mxu0 %vm24_vm0, %v5566_v57 }
 0x13a   :  { %4534 = vmatprep.mubr.msk.f32.mxu0 %vm24_vm0, %v5570_v58 }
 0x13d   :  { %4535 = vmatmul.mubr.msk.f32.gmra.mrb[12].mxu0 %vm24_vm0, %v5574_v59 }
 0x13e   :  { %4537 = vmatprep.mubr.msk.f32.mxu0 %vm24_vm0, %v819_v62 }
 0x141   :  { %4538 = vmatmul.mubr.msk.f32.gmra.mrb[14].mxu0 %vm24_vm0, %v820_v0 }
 0x142   :  { %4542 = vmatprep.mubr.msk.f32.mxu0 %vm24_vm0, %v1379_v1 }
 0x145   :  { %4543 = vmatmul.mubr.msk.f32.vlgmr.msra.gmra.mrb[0].mxu0 %vm24_vm0, %v1380_v2 }
 0x146   :  { %4567 = vmatpush3.msk.msra.mxu0 %vm326_vm2, %v3888_v63  ;;  %4545 = vmatprep.mubr.msk.f32.mxu0 %vm24_vm0, %v1381_v5 }
 0x147   :  { %4592 = vmatprep.subr.msk.mxu0 %vm326_vm2, %v3906_v4 }
 0x149   :  { %4546 = vmatmul.mubr.msk.f32.gmra.mrb[2].mxu0 %vm24_vm0, %v1382_v6 }
 0x14a   :  { %4548 = vmatprep.mubr.msk.f32.mxu0 %vm24_vm0, %v1383_v7 }
 0x14d   :  { %4549 = vmatmul.mubr.msk.f32.gmra.mrb[4].mxu0 %vm24_vm0, %v1384_v8 }
 0x14e   :  { %4551 = vmatprep.mubr.msk.f32.mxu0 %vm24_vm0, %v1385_v9 }
 0x151   :  { %4552 = vmatmul.mubr.msk.f32.gmra.mrb[6].mxu0 %vm24_vm0, %v1386_v11 }
 0x152   :  { %4554 = vmatprep.mubr.msk.f32.mxu0 %vm24_vm0, %v1389_v10 }
 0x155   :  { %4555 = vmatmul.mubr.msk.f32.gmra.mrb[8].mxu0 %vm24_vm0, %v1390_v12 }
 0x156   :  { %4557 = vmatprep.mubr.msk.f32.mxu0 %vm24_vm0, %v1391_v13 }
 0x159   :  { %4558 = vmatmul.mubr.msk.f32.gmra.mrb[10].mxu0 %vm24_vm0, %v1392_v14 }
 0x15a   :  { %4560 = vmatprep.mubr.msk.f32.mxu0 %vm24_vm0, %v1393_v15 }
 0x15d   :  { %4561 = vmatmul.mubr.msk.f32.gmra.mrb[12].mxu0 %vm24_vm0, %v1394_v16 }
 0x15e   :  { %4563 = vmatprep.mubr.msk.f32.mxu0 %vm24_vm0, %v1395_v17 }
 0x161   :  { %4564 = vmatmul.mubr.msk.f32.gmra.mrb[14].mxu0 %vm24_vm0, %v1396_v18 }
 0x162   :  { %4568 = vmatprep.mubr.msk.f32.mxu0 %vm24_vm0, %v1380_v2 }
 0x165   :  { %4569 = vmatmul.mubr.msk.f32.vlgmr.msra.gmra.mrb[0].mxu0 %vm24_vm0, %v1381_v5 }
 0x166   :  { %4593 = vmatpush3.msk.msra.mxu0 %vm326_vm2, %v3906_v4  ;;  %4571 = vmatprep.mubr.msk.f32.mxu0 %vm24_vm0, %v1382_v6 }
 0x169   :  { %4572 = vmatmul.mubr.msk.f32.gmra.mrb[2].mxu0 %vm24_vm0, %v1383_v7 }
 0x16a   :  { %4574 = vmatprep.mubr.msk.f32.mxu0 %vm24_vm0, %v1384_v8 }
 0x16d   :  { %4575 = vmatmul.mubr.msk.f32.gmra.mrb[4].mxu0 %vm24_vm0, %v1385_v9 }
 0x16e   :  { %4577 = vmatprep.mubr.msk.f32.mxu0 %vm24_vm0, %v1386_v11 }
 0x171   :  { %4578 = vmatmul.mubr.msk.f32.gmra.mrb[6].mxu0 %vm24_vm0, %v1387_v19 }
 0x172   :  { %4580 = vmatprep.mubr.msk.f32.mxu0 %vm24_vm0, %v1390_v12 }
 0x175   :  { %4581 = vmatmul.mubr.msk.f32.gmra.mrb[8].mxu0 %vm24_vm0, %v1391_v13 }
 0x176   :  { %4583 = vmatprep.mubr.msk.f32.mxu0 %vm24_vm0, %v1392_v14 }
 0x179   :  { %4584 = vmatmul.mubr.msk.f32.gmra.mrb[10].mxu0 %vm24_vm0, %v1393_v15 }
 0x17a   :  { %4586 = vmatprep.mubr.msk.f32.mxu0 %vm24_vm0, %v1394_v16 }
 0x17d   :  { %4587 = vmatmul.mubr.msk.f32.gmra.mrb[12].mxu0 %vm24_vm0, %v1395_v17 }
 0x17e   :  { %4589 = vmatprep.mubr.msk.f32.mxu0 %vm24_vm0, %v1396_v18 }
 0x181   :  { %4590 = vmatmul.mubr.msk.f32.gmra.mrb[14].mxu0 %vm24_vm0, %v1397_v20 }
 0x182   :  { %4594 = vmatprep.mubr.msk.f32.mxu0 %vm24_vm0, %v1381_v5 }
 0x185   :  { %4595 = vmatmul.mubr.msk.f32.vlgmr.msra.gmra.mrb[0].mxu0 %vm24_vm0, %v1382_v6 }
 0x186   :  { %4597 = vmatprep.mubr.msk.f32.mxu0 %vm24_vm0, %v1383_v7 }
 0x189   :  { %4598 = vmatmul.mubr.msk.f32.gmra.mrb[2].mxu0 %vm24_vm0, %v1384_v8 }
 0x18a   :  { %4600 = vmatprep.mubr.msk.f32.mxu0 %vm24_vm0, %v1385_v9 }
 0x18d   :  { %4601 = vmatmul.mubr.msk.f32.gmra.mrb[4].mxu0 %vm24_vm0, %v1386_v11 }
 0x18e   :  { %4603 = vmatprep.mubr.msk.f32.mxu0 %vm24_vm0, %v1387_v19 }
 0x191   :  { %4604 = vmatmul.mubr.msk.f32.gmra.mrb[6].mxu0 %vm24_vm0, %v1388_v21 }
 0x192   :  { %4606 = vmatprep.mubr.msk.f32.mxu0 %vm24_vm0, %v1391_v13 }
 0x195   :  { %4607 = vmatmul.mubr.msk.f32.gmra.mrb[8].mxu0 %vm24_vm0, %v1392_v14 }
 0x196   :  { %4609 = vmatprep.mubr.msk.f32.mxu0 %vm24_vm0, %v1393_v15 }
 0x199   :  { %4610 = vmatmul.mubr.msk.f32.gmra.mrb[10].mxu0 %vm24_vm0, %v1394_v16 }
 0x19a   :  { %4612 = vmatprep.mubr.msk.f32.mxu0 %vm24_vm0, %v1395_v17 }
 0x19d   :  { %4613 = vmatmul.mubr.msk.f32.gmra.mrb[12].mxu0 %vm24_vm0, %v1396_v18 }
 0x19e   :  { %4615 = vmatprep.mubr.msk.f32.mxu0 %vm24_vm0, %v1397_v20 }
 0x1a1   :  { %4616 = vmatmul.mubr.msk.f32.gmra.mrb[14].mxu0 %vm24_vm0, %v1398_v22 }
 0x258   :  { %v4596_v26 = vpop.f32.mrb[0].mxu0 }
 0x259   :  { %v1965_v27 = vadd.f32 %v4596_v26, %v5789_v25  ;;  %v1862_v28 = vpop.f32.mrb[1].mxu0  ;;  %v2014_v26 = vld [vmem:[#allocation3] sm:$0xff] }
 0x25a   :  { %v1964_v29 = vadd.f32 %v5789_v25, %v1862_v28  ;;  %v3975_v28 = vld [vmem:[%s6079_s3 + $0x8] sm:$0xff] }
 0x25b   :  { %v1981_v30 = vmax.f32 %v1965_v27, 0.0 }
 0x25c   :  { %v1980_v31 = vmax.f32 %v1964_v29, 0.0  ;;  %v4599_v32 = vpop.f32.mrb[2].mxu0  ;;  %v2024_v29 = vld [vmem:[#allocation3 + $0xa0] sm:$0xff] }
 0x25d   :  { %1999 = vst.msk [vmem:[#allocation3 + $0x21] sm:$0xff] %vm66_vm3, %v1981_v30  ;;  %v1967_v33 = vadd.f32 %v4599_v32, %v5789_v25  ;;  %v1872_v34 = vpop.f32.mrb[3].mxu0  ;;  %v3992_v30 = vld [vmem:[%s6079_s3 + $0x20] sm:$0xff]  ;;  %v2033_v32 = vld [vmem:[#allocation3 + $0x130] sm:$0xff] }
 0x25e   :  { %1998 = vst.msk [vmem:[#allocation3 + $0x11] sm:$0xff] %vm66_vm3, %v1980_v31  ;;  %v1966_v35 = vadd.f32 %v5789_v25, %v1872_v34  ;;  %v2023_v31 = vld [vmem:[#allocation3 + $0x90] sm:$0xff] }
 0x25f   :  { %v1983_v36 = vmax.f32 %v1967_v33, 0.0  ;;  %v2550_v33 = vld [vmem:[#allocation3 + $0x1] sm:$0xff] }
 0x260   :  { %v1982_v37 = vmax.f32 %v1966_v35, 0.0  ;;  %v4602_v38 = vpop.f32.mrb[4].mxu0  ;;  %v4009_v35 = vld [vmem:[%s6079_s3 + $0x38] sm:$0xff] }
 0x261   :  { %2001 = vst.msk [vmem:[#allocation3 + $0x41] sm:$0xff] %vm66_vm3, %v1983_v36  ;;  %v1969_v39 = vadd.f32 %v4602_v38, %v5789_v25  ;;  %v1882_v40 = vpop.f32.mrb[5].mxu0 }
 0x262   :  { %2000 = vst.msk [vmem:[#allocation3 + $0x31] sm:$0xff] %vm66_vm3, %v1982_v37  ;;  %v1968_v41 = vadd.f32 %v5789_v25, %v1882_v40 }
 0x263   :  { %v1985_v42 = vmax.f32 %v1969_v39, 0.0 }
 0x264   :  { %v1984_v43 = vmax.f32 %v1968_v41, 0.0  ;;  %v4605_v44 = vpop.f32.mrb[6].mxu0  ;;  %v5809_v49 = vld [vmem:[#allocation3 + $0x20] sm:$0xff] }
 0x265   :  { %2003 = vst.msk [vmem:[#allocation3 + $0x61] sm:$0xff] %vm66_vm3, %v1985_v42  ;;  %v1971_v45 = vadd.f32 %v4605_v44, %v5789_v25  ;;  %v1892_v46 = vpop.f32.mrb[7].mxu0  ;;  %v5803_v47 = vld [vmem:[#allocation3 + $0x10] sm:$0xff]  ;;  %v2552_v36 = vld [vmem:[#allocation3 + $0x21] sm:$0xff] }
 0x266   :  { %2002 = vst.msk [vmem:[#allocation3 + $0x51] sm:$0xff] %vm66_vm3, %v1984_v43  ;;  %v1970_v48 = vadd.f32 %v5789_v25, %v1892_v46  ;;  %4620 = vmatprep.mubr.msk.f32.mxu1 %vm66_vm3, %v5803_v47  ;;  %v2551_v34 = vld [vmem:[#allocation3 + $0x11] sm:$0xff]  ;;  %v2560_v41 = vld [vmem:[#allocation3 + $0xa1] sm:$0xff] }
 0x267   :  { %v1987_v51 = vmax.f32 %v1971_v45, 0.0  ;;  %4621 = vmatmul.mubr.msk.f32.vlgmr.msra.gmra.mrb[0].mxu1 %vm66_vm3, %v5809_v49 }
 0x268   :  { %v1986_v52 = vmax.f32 %v1970_v48, 0.0  ;;  %4645 = vmatpush3.msra.mxu1 %v2034_v24  ;;  %v4608_v53 = vpop.f32.mrb[8].mxu0  ;;  %v5827_v58 = vld [vmem:[#allocation3 + $0x40] sm:$0xff] }
 0x269   :  { %2005 = vst.msk [vmem:[#allocation3 + $0x81] sm:$0xff] %vm66_vm3, %v1987_v51  ;;  %v1973_v54 = vadd.f32 %v4608_v53, %v5789_v25  ;;  %v1902_v55 = vpop.f32.mrb[9].mxu0  ;;  %v5820_v56 = vld [vmem:[#allocation3 + $0x30] sm:$0xff]  ;;  %4670 = vmatprep.subr.mxu1 %v5814_v50  ;;  %v2554_v38 = vld [vmem:[#allocation3 + $0x41] sm:$0xff] }
 0x26a   :  { %2004 = vst.msk [vmem:[#allocation3 + $0x71] sm:$0xff] %vm66_vm3, %v1986_v52  ;;  %v1972_v57 = vadd.f32 %v5789_v25, %v1902_v55  ;;  %4623 = vmatprep.mubr.msk.f32.mxu1 %vm66_vm3, %v5820_v56  ;;  %v2553_v37 = vld [vmem:[#allocation3 + $0x31] sm:$0xff]  ;;  %v4043_v53 = vld [vmem:[%s6079_s3 + $0x28] sm:$0xff] }
 0x26b   :  { %v1989_v59 = vmax.f32 %v1973_v54, 0.0  ;;  %4624 = vmatmul.mubr.msk.f32.gmra.mrb[2].mxu1 %vm66_vm3, %v5827_v58  ;;  %v2559_v54 = vld [vmem:[#allocation3 + $0x91] sm:$0xff] }
 0x26c   :  { %v1988_v60 = vmax.f32 %v1972_v57, 0.0  ;;  %v4611_v61 = vpop.f32.mrb[10].mxu0  ;;  %v5839_v1 = vld [vmem:[#allocation3 + $0x60] sm:$0xff]  ;;  %v2569_v55 = vld [vmem:[#allocation3 + $0x131] sm:$0xff] }
 0x26d   :  { %2007 = vst.msk [vmem:[#allocation3 + $0xc1] sm:$0xff] %vm66_vm3, %v1989_v59  ;;  %v1975_v62 = vadd.f32 %v4611_v61, %v5789_v25  ;;  %v1912_v63 = vpop.f32.mrb[11].mxu0  ;;  %v5833_v3 = vld [vmem:[#allocation3 + $0x50] sm:$0xff]  ;;  %v2556_v40 = vld [vmem:[#allocation3 + $0x61] sm:$0xff] }
 0x26e   :  { %2006 = vst.msk [vmem:[#allocation3 + $0xb1] sm:$0xff] %vm66_vm3, %v1988_v60  ;;  %v1974_v0 = vadd.f32 %v5789_v25, %v1912_v63  ;;  %4626 = vmatprep.mubr.msk.f32.mxu1 %vm66_vm3, %v5833_v3  ;;  %v2555_v39 = vld [vmem:[#allocation3 + $0x51] sm:$0xff]  ;;  %v3121_v59 = vld [vmem:[#allocation3 + $0x22] sm:$0xff] }
 0x26f   :  { %v1991_v2 = vmax.f32 %v1975_v62, 0.0  ;;  %4627 = vmatmul.mubr.msk.f32.gmra.mrb[4].mxu1 %vm66_vm3, %v5839_v1  ;;  %v3120_v57 = vld [vmem:[#allocation3 + $0x12] sm:$0xff]  ;;  %v3123_v61 = vld [vmem:[#allocation3 + $0x42] sm:$0xff] }
 0x270   :  { %v1990_v4 = vmax.f32 %v1974_v0, 0.0  ;;  %v4614_v5 = vpop.f32.mrb[12].mxu0  ;;  %v2022_v10 = vld [vmem:[#allocation3 + $0x80] sm:$0xff]  ;;  %v3122_v60 = vld [vmem:[#allocation3 + $0x32] sm:$0xff] }
 0x271   :  { %2009 = vst.msk [vmem:[#allocation3 + $0xe1] sm:$0xff] %vm66_vm3, %v1991_v2  ;;  %v1977_v6 = vadd.f32 %v4614_v5, %v5789_v25  ;;  %v1922_v7 = vpop.f32.mrb[13].mxu0  ;;  %v5845_v8 = vld [vmem:[#allocation3 + $0x70] sm:$0xff]  ;;  %v2558_v51 = vld [vmem:[#allocation3 + $0x81] sm:$0xff] }
 0x272   :  { %2008 = vst.msk [vmem:[#allocation3 + $0xd1] sm:$0xff] %vm66_vm3, %v1990_v4  ;;  %v1976_v9 = vadd.f32 %v5789_v25, %v1922_v7  ;;  %4629 = vmatprep.mubr.msk.f32.mxu1 %vm66_vm3, %v5845_v8  ;;  %v2557_v42 = vld [vmem:[#allocation3 + $0x71] sm:$0xff]  ;;  %v3125_v63 = vld [vmem:[#allocation3 + $0x62] sm:$0xff] }
 0x273   :  { %v1993_v11 = vmax.f32 %v1977_v6, 0.0  ;;  %4630 = vmatmul.mubr.msk.f32.gmra.mrb[6].mxu1 %vm66_vm3, %v2022_v10  ;;  %v3124_v62 = vld [vmem:[#allocation3 + $0x52] sm:$0xff] }
 0x274   :  { %v1992_v12 = vmax.f32 %v1976_v9, 0.0  ;;  %v4617_v13 = vpop.f32.mrb[14].mxu0  ;;  %v2026_v18 = vld [vmem:[#allocation3 + $0xc0] sm:$0xff]  ;;  %v3126_v0 = vld [vmem:[#allocation3 + $0x72] sm:$0xff] }
 0x275   :  { %2011 = vst.msk [vmem:[#allocation3 + $0x101] sm:$0xff] %vm66_vm3, %v1993_v11  ;;  %v1979_v14 = vadd.f32 %v4617_v13, %v5789_v25  ;;  %v1932_v15 = vpop.f32.mrb[15].mxu0  ;;  %v2025_v16 = vld [vmem:[#allocation3 + $0xb0] sm:$0xff]  ;;  %v2562_v44 = vld [vmem:[#allocation3 + $0xc1] sm:$0xff]  ;;  %v4077_v13 = vld [vmem:[%s6081_s4] ss:$0 sm:$0xff] }
 0x276   :  { %2010 = vst.msk [vmem:[#allocation3 + $0xf1] sm:$0xff] %vm66_vm3, %v1992_v12  ;;  %v1978_v17 = vadd.f32 %v5789_v25, %v1932_v15  ;;  %4632 = vmatprep.mubr.msk.f32.mxu1 %vm66_vm3, %v2025_v16  ;;  %v2561_v43 = vld [vmem:[#allocation3 + $0xb1] sm:$0xff]  ;;  %v3131_v2 = vld [vmem:[#allocation3 + $0xc2] sm:$0xff] }
 0x277   :  { %v1995_v19 = vmax.f32 %v1979_v14, 0.0  ;;  %4633 = vmatmul.mubr.msk.f32.gmra.mrb[8].mxu1 %vm66_vm3, %v2026_v18  ;;  %v3127_v9 = vld [vmem:[#allocation3 + $0x82] sm:$0xff]  ;;  %v3128_v11 = vld [vmem:[#allocation3 + $0x92] sm:$0xff] }
 0x278   :  { %v1994_v20 = vmax.f32 %v1978_v17, 0.0  ;;  %v2028_v22 = vld [vmem:[#allocation3 + $0xe0] sm:$0xff]  ;;  %v3138_v12 = vld [vmem:[#allocation3 + $0x132] sm:$0xff] }
 0x279   :  { %2013 = vst.msk [vmem:[#allocation3 + $0x121] sm:$0xff] %vm66_vm3, %v1995_v19  ;;  %v2027_v21 = vld [vmem:[#allocation3 + $0xd0] sm:$0xff]  ;;  %v2564_v46 = vld [vmem:[#allocation3 + $0xe1] sm:$0xff] }
 0x27a   :  { %2012 = vst.msk [vmem:[#allocation3 + $0x111] sm:$0xff] %vm66_vm3, %v1994_v20  ;;  %4635 = vmatprep.mubr.msk.f32.mxu1 %vm66_vm3, %v2027_v21  ;;  %v2563_v45 = vld [vmem:[#allocation3 + $0xd1] sm:$0xff]  ;;  %v3133_v5 = vld [vmem:[#allocation3 + $0xe2] sm:$0xff] }
 0x27b   :  { %4636 = vmatmul.mubr.msk.f32.gmra.mrb[10].mxu1 %vm66_vm3, %v2028_v22  ;;  %v3132_v4 = vld [vmem:[#allocation3 + $0xd2] sm:$0xff] }
 0x27c   :  { %v2030_v24 = vld [vmem:[#allocation3 + $0x100] sm:$0xff] }
 0x27d   :  { %v2029_v23 = vld [vmem:[#allocation3 + $0xf0] sm:$0xff]  ;;  %v2566_v48 = vld [vmem:[#allocation3 + $0x101] sm:$0xff] }
 0x27e   :  { %4638 = vmatprep.mubr.msk.f32.mxu1 %vm66_vm3, %v2029_v23  ;;  %v3134_v6 = vld [vmem:[#allocation3 + $0xf2] sm:$0xff]  ;;  %v3135_v7 = vld [vmem:[#allocation3 + $0x102] sm:$0xff] }
 0x27f   :  { %4639 = vmatmul.mubr.msk.f32.gmra.mrb[12].mxu1 %vm66_vm3, %v2030_v24 }
 0x280   :  { %v2032_v27 = vld [vmem:[#allocation3 + $0x120] sm:$0xff] }
 0x281   :  { %v2031_v25 = vld [vmem:[#allocation3 + $0x110] sm:$0xff]  ;;  %v2568_v52 = vld [vmem:[#allocation3 + $0x121] sm:$0xff] }
 0x282   :  { %4641 = vmatprep.mubr.msk.f32.mxu1 %vm66_vm3, %v2031_v25 }
 0x283   :  { %4642 = vmatmul.mubr.msk.f32.gmra.mrb[14].mxu1 %vm66_vm3, %v2032_v27 }
 0x284   :  { %4646 = vmatprep.mubr.msk.f32.mxu1 %vm66_vm3, %v2014_v26 }
 0x287   :  { %4647 = vmatmul.mubr.msk.f32.vlgmr.msra.gmra.mrb[0].mxu1 %vm66_vm3, %v5803_v47  ;;  %v2565_v47 = vld [vmem:[#allocation3 + $0xf1] sm:$0xff] }
 0x288   :  { %4671 = vmatpush3.msra.mxu1 %v5814_v50  ;;  %4649 = vmatprep.mubr.msk.f32.mxu1 %vm66_vm3, %v5809_v49  ;;  %v4026_v50 = vld [vmem:[%s6079_s3 + $0x10] sm:$0xff] }
 0x289   :  { %4696 = vmatprep.subr.mxu1 %v3975_v28 }
 0x28b   :  { %4650 = vmatmul.mubr.msk.f32.gmra.mrb[2].mxu1 %vm66_vm3, %v5820_v56 }
 0x28c   :  { %4652 = vmatprep.mubr.msk.f32.mxu1 %vm66_vm3, %v5827_v58 }
 0x28f   :  { %4653 = vmatmul.mubr.msk.f32.gmra.mrb[4].mxu1 %vm66_vm3, %v5833_v3 }
 0x290   :  { %4655 = vmatprep.mubr.msk.f32.mxu1 %vm66_vm3, %v5839_v1 }
 0x293   :  { %4656 = vmatmul.mubr.msk.f32.gmra.mrb[6].mxu1 %vm66_vm3, %v5845_v8 }
 0x294   :  { %4658 = vmatprep.mubr.msk.f32.mxu1 %vm66_vm3, %v2024_v29 }
 0x297   :  { %4659 = vmatmul.mubr.msk.f32.gmra.mrb[8].mxu1 %vm66_vm3, %v2025_v16 }
 0x298   :  { %4661 = vmatprep.mubr.msk.f32.mxu1 %vm66_vm3, %v2026_v18 }
 0x29b   :  { %4662 = vmatmul.mubr.msk.f32.gmra.mrb[10].mxu1 %vm66_vm3, %v2027_v21 }
 0x29c   :  { %4664 = vmatprep.mubr.msk.f32.mxu1 %vm66_vm3, %v2028_v22 }
 0x29f   :  { %4665 = vmatmul.mubr.msk.f32.gmra.mrb[12].mxu1 %vm66_vm3, %v2029_v23 }
 0x2a0   :  { %4667 = vmatprep.mubr.msk.f32.mxu1 %vm66_vm3, %v2030_v24 }
 0x2a3   :  { %4668 = vmatmul.mubr.msk.f32.gmra.mrb[14].mxu1 %vm66_vm3, %v2031_v25 }
 0x2a4   :  { %4672 = vmatprep.mubr.msk.f32.mxu1 %vm66_vm3, %v5809_v49  ;;  %v2567_v49 = vld [vmem:[#allocation3 + $0x111] sm:$0xff] }
 0x2a7   :  { %4673 = vmatmul.mubr.msk.f32.vlgmr.msra.gmra.mrb[0].mxu1 %vm66_vm3, %v5820_v56  ;;  %v3119_v56 = vld [vmem:[#allocation3 + $0x2] sm:$0xff] }
 0x2a8   :  { %4697 = vmatpush3.msra.mxu1 %v3975_v28  ;;  %4675 = vmatprep.mubr.msk.f32.mxu1 %vm66_vm3, %v5827_v58  ;;  %v4060_v58 = vld [vmem:[%s6079_s3 + $0x40] sm:$0xff] }
 0x2a9   :  { %4722 = vmatprep.subr.mxu1 %v3992_v30 }
 0x2ab   :  { %4676 = vmatmul.mubr.msk.f32.gmra.mrb[2].mxu1 %vm66_vm3, %v5833_v3  ;;  %v3129_v3 = vld [vmem:[#allocation3 + $0xa2] sm:$0xff] }
 0x2ac   :  { %4678 = vmatprep.mubr.msk.f32.mxu1 %vm66_vm3, %v5839_v1  ;;  %v3130_v1 = vld [vmem:[#allocation3 + $0xb2] sm:$0xff] }
 0x2af   :  { %4679 = vmatmul.mubr.msk.f32.gmra.mrb[4].mxu1 %vm66_vm3, %v5845_v8  ;;  %v3136_v8 = vld [vmem:[#allocation3 + $0x112] sm:$0xff] }
 0x2b0   :  { %4681 = vmatprep.mubr.msk.f32.mxu1 %vm66_vm3, %v2022_v10  ;;  %v3137_v10 = vld [vmem:[#allocation3 + $0x122] sm:$0xff] }
 0x2b3   :  { %4682 = vmatmul.mubr.msk.f32.gmra.mrb[6].mxu1 %vm66_vm3, %v2023_v31 }
 0x2b4   :  { %4684 = vmatprep.mubr.msk.f32.mxu1 %vm66_vm3, %v2026_v18 }
 0x2b7   :  { %4685 = vmatmul.mubr.msk.f32.gmra.mrb[8].mxu1 %vm66_vm3, %v2027_v21 }
 0x2b8   :  { %4687 = vmatprep.mubr.msk.f32.mxu1 %vm66_vm3, %v2028_v22 }
 0x2bb   :  { %4688 = vmatmul.mubr.msk.f32.gmra.mrb[10].mxu1 %vm66_vm3, %v2029_v23 }
 0x2bc   :  { %4690 = vmatprep.mubr.msk.f32.mxu1 %vm66_vm3, %v2030_v24 }
 0x2bf   :  { %4691 = vmatmul.mubr.msk.f32.gmra.mrb[12].mxu1 %vm66_vm3, %v2031_v25 }
 0x2c0   :  { %4693 = vmatprep.mubr.msk.f32.mxu1 %vm66_vm3, %v2032_v27 }
 0x2c3   :  { %4694 = vmatmul.mubr.msk.f32.gmra.mrb[14].mxu1 %vm66_vm3, %v2033_v32 }
 0x2c4   :  { %4698 = vmatprep.mubr.msk.f32.mxu1 %vm66_vm3, %v2550_v33 }
 0x2c7   :  { %4699 = vmatmul.mubr.msk.f32.vlgmr.msra.gmra.mrb[0].mxu1 %vm66_vm3, %v2551_v34 }
 0x2c8   :  { %4723 = vmatpush3.msra.mxu1 %v3992_v30  ;;  %4701 = vmatprep.mubr.msk.f32.mxu1 %vm66_vm3, %v2552_v36 }
 0x2c9   :  { %4748 = vmatprep.subr.mxu1 %v4009_v35 }
 0x2cb   :  { %4702 = vmatmul.mubr.msk.f32.gmra.mrb[2].mxu1 %vm66_vm3, %v2553_v37 }
 0x2cc   :  { %4704 = vmatprep.mubr.msk.f32.mxu1 %vm66_vm3, %v2554_v38 }
 0x2cf   :  { %4705 = vmatmul.mubr.msk.f32.gmra.mrb[4].mxu1 %vm66_vm3, %v2555_v39 }
 0x2d0   :  { %4707 = vmatprep.mubr.msk.f32.mxu1 %vm66_vm3, %v2556_v40 }
 0x2d3   :  { %4708 = vmatmul.mubr.msk.f32.gmra.mrb[6].mxu1 %vm66_vm3, %v2557_v42 }
 0x2d4   :  { %4710 = vmatprep.mubr.msk.f32.mxu1 %vm66_vm3, %v2560_v41 }
 0x2d7   :  { %4711 = vmatmul.mubr.msk.f32.gmra.mrb[8].mxu1 %vm66_vm3, %v2561_v43 }
 0x2d8   :  { %4713 = vmatprep.mubr.msk.f32.mxu1 %vm66_vm3, %v2562_v44 }
 0x2db   :  { %4714 = vmatmul.mubr.msk.f32.gmra.mrb[10].mxu1 %vm66_vm3, %v2563_v45 }
 0x2dc   :  { %4716 = vmatprep.mubr.msk.f32.mxu1 %vm66_vm3, %v2564_v46 }
 0x2df   :  { %4717 = vmatmul.mubr.msk.f32.gmra.mrb[12].mxu1 %vm66_vm3, %v2565_v47 }
 0x2e0   :  { %4719 = vmatprep.mubr.msk.f32.mxu1 %vm66_vm3, %v2566_v48 }
 0x2e3   :  { %4720 = vmatmul.mubr.msk.f32.gmra.mrb[14].mxu1 %vm66_vm3, %v2567_v49 }
 0x2e4   :  { %4724 = vmatprep.mubr.msk.f32.mxu1 %vm66_vm3, %v2551_v34 }
 0x2e7   :  { %4725 = vmatmul.mubr.msk.f32.vlgmr.msra.gmra.mrb[0].mxu1 %vm66_vm3, %v2552_v36 }
 0x2e8   :  { %4749 = vmatpush3.msra.mxu1 %v4009_v35  ;;  %4727 = vmatprep.mubr.msk.f32.mxu1 %vm66_vm3, %v2553_v37 }
 0x2e9   :  { %4774 = vmatprep.subr.mxu1 %v4026_v50 }
 0x2eb   :  { %4728 = vmatmul.mubr.msk.f32.gmra.mrb[2].mxu1 %vm66_vm3, %v2554_v38 }
 0x2ec   :  { %4730 = vmatprep.mubr.msk.f32.mxu1 %vm66_vm3, %v2555_v39 }
 0x2ef   :  { %4731 = vmatmul.mubr.msk.f32.gmra.mrb[4].mxu1 %vm66_vm3, %v2556_v40 }
 0x2f0   :  { %4733 = vmatprep.mubr.msk.f32.mxu1 %vm66_vm3, %v2557_v42 }
 0x2f3   :  { %4734 = vmatmul.mubr.msk.f32.gmra.mrb[6].mxu1 %vm66_vm3, %v2558_v51 }
 0x2f4   :  { %4736 = vmatprep.mubr.msk.f32.mxu1 %vm66_vm3, %v2561_v43 }
 0x2f7   :  { %4737 = vmatmul.mubr.msk.f32.gmra.mrb[8].mxu1 %vm66_vm3, %v2562_v44 }
 0x2f8   :  { %4739 = vmatprep.mubr.msk.f32.mxu1 %vm66_vm3, %v2563_v45 }
 0x2fb   :  { %4740 = vmatmul.mubr.msk.f32.gmra.mrb[10].mxu1 %vm66_vm3, %v2564_v46 }
 0x2fc   :  { %4742 = vmatprep.mubr.msk.f32.mxu1 %vm66_vm3, %v2565_v47 }
 0x2ff   :  { %4743 = vmatmul.mubr.msk.f32.gmra.mrb[12].mxu1 %vm66_vm3, %v2566_v48 }
 0x300   :  { %4745 = vmatprep.mubr.msk.f32.mxu1 %vm66_vm3, %v2567_v49 }
 0x303   :  { %4746 = vmatmul.mubr.msk.f32.gmra.mrb[14].mxu1 %vm66_vm3, %v2568_v52 }
 0x304   :  { %4750 = vmatprep.mubr.msk.f32.mxu1 %vm66_vm3, %v2552_v36 }
 0x307   :  { %4751 = vmatmul.mubr.msk.f32.vlgmr.msra.gmra.mrb[0].mxu1 %vm66_vm3, %v2553_v37 }
 0x308   :  { %4775 = vmatpush3.msra.mxu1 %v4026_v50  ;;  %4753 = vmatprep.mubr.msk.f32.mxu1 %vm66_vm3, %v2554_v38 }
 0x309   :  { %4800 = vmatprep.subr.mxu1 %v4043_v53 }
 0x30b   :  { %4754 = vmatmul.mubr.msk.f32.gmra.mrb[2].mxu1 %vm66_vm3, %v2555_v39 }
 0x30c   :  { %4756 = vmatprep.mubr.msk.f32.mxu1 %vm66_vm3, %v2556_v40 }
 0x30f   :  { %4757 = vmatmul.mubr.msk.f32.gmra.mrb[4].mxu1 %vm66_vm3, %v2557_v42 }
 0x310   :  { %4759 = vmatprep.mubr.msk.f32.mxu1 %vm66_vm3, %v2558_v51 }
 0x313   :  { %4760 = vmatmul.mubr.msk.f32.gmra.mrb[6].mxu1 %vm66_vm3, %v2559_v54 }
 0x314   :  { %4762 = vmatprep.mubr.msk.f32.mxu1 %vm66_vm3, %v2562_v44 }
 0x317   :  { %4763 = vmatmul.mubr.msk.f32.gmra.mrb[8].mxu1 %vm66_vm3, %v2563_v45 }
 0x318   :  { %4765 = vmatprep.mubr.msk.f32.mxu1 %vm66_vm3, %v2564_v46 }
 0x31b   :  { %4766 = vmatmul.mubr.msk.f32.gmra.mrb[10].mxu1 %vm66_vm3, %v2565_v47 }
 0x31c   :  { %4768 = vmatprep.mubr.msk.f32.mxu1 %vm66_vm3, %v2566_v48 }
 0x31f   :  { %4769 = vmatmul.mubr.msk.f32.gmra.mrb[12].mxu1 %vm66_vm3, %v2567_v49 }
 0x320   :  { %4771 = vmatprep.mubr.msk.f32.mxu1 %vm66_vm3, %v2568_v52 }
 0x323   :  { %4772 = vmatmul.mubr.msk.f32.gmra.mrb[14].mxu1 %vm66_vm3, %v2569_v55 }
 0x324   :  { %4776 = vmatprep.mubr.msk.f32.mxu1 %vm66_vm3, %v3119_v56 }
 0x327   :  { %4777 = vmatmul.mubr.msk.f32.vlgmr.msra.gmra.mrb[0].mxu1 %vm66_vm3, %v3120_v57 }
 0x328   :  { %4801 = vmatpush3.msra.mxu1 %v4043_v53  ;;  %4779 = vmatprep.mubr.msk.f32.mxu1 %vm66_vm3, %v3121_v59 }
 0x329   :  { %4826 = vmatprep.subr.mxu1 %v4060_v58 }
 0x32b   :  { %4780 = vmatmul.mubr.msk.f32.gmra.mrb[2].mxu1 %vm66_vm3, %v3122_v60 }
 0x32c   :  { %4782 = vmatprep.mubr.msk.f32.mxu1 %vm66_vm3, %v3123_v61 }
 0x32f   :  { %4783 = vmatmul.mubr.msk.f32.gmra.mrb[4].mxu1 %vm66_vm3, %v3124_v62 }
 0x330   :  { %4785 = vmatprep.mubr.msk.f32.mxu1 %vm66_vm3, %v3125_v63 }
 0x333   :  { %4786 = vmatmul.mubr.msk.f32.gmra.mrb[6].mxu1 %vm66_vm3, %v3126_v0 }
 0x334   :  { %4788 = vmatprep.mubr.msk.f32.mxu1 %vm66_vm3, %v3129_v3 }
 0x337   :  { %4789 = vmatmul.mubr.msk.f32.gmra.mrb[8].mxu1 %vm66_vm3, %v3130_v1 }
 0x338   :  { %4791 = vmatprep.mubr.msk.f32.mxu1 %vm66_vm3, %v3131_v2 }
 0x33b   :  { %4792 = vmatmul.mubr.msk.f32.gmra.mrb[10].mxu1 %vm66_vm3, %v3132_v4 }
 0x33c   :  { %4794 = vmatprep.mubr.msk.f32.mxu1 %vm66_vm3, %v3133_v5 }
 0x33f   :  { %4795 = vmatmul.mubr.msk.f32.gmra.mrb[12].mxu1 %vm66_vm3, %v3134_v6 }
 0x340   :  { %4797 = vmatprep.mubr.msk.f32.mxu1 %vm66_vm3, %v3135_v7 }
 0x343   :  { %4798 = vmatmul.mubr.msk.f32.gmra.mrb[14].mxu1 %vm66_vm3, %v3136_v8 }
 0x344   :  { %4802 = vmatprep.mubr.msk.f32.mxu1 %vm66_vm3, %v3120_v57 }
 0x347   :  { %4803 = vmatmul.mubr.msk.f32.vlgmr.msra.gmra.mrb[0].mxu1 %vm66_vm3, %v3121_v59 }
 0x348   :  { %4827 = vmatpush3.msra.mxu1 %v4060_v58  ;;  %4805 = vmatprep.mubr.msk.f32.mxu1 %vm66_vm3, %v3122_v60 }
 0x34b   :  { %4806 = vmatmul.mubr.msk.f32.gmra.mrb[2].mxu1 %vm66_vm3, %v3123_v61 }
 0x34c   :  { %4808 = vmatprep.mubr.msk.f32.mxu1 %vm66_vm3, %v3124_v62 }
 0x34f   :  { %4809 = vmatmul.mubr.msk.f32.gmra.mrb[4].mxu1 %vm66_vm3, %v3125_v63 }
 0x350   :  { %4811 = vmatprep.mubr.msk.f32.mxu1 %vm66_vm3, %v3126_v0 }
 0x353   :  { %4812 = vmatmul.mubr.msk.f32.gmra.mrb[6].mxu1 %vm66_vm3, %v3127_v9 }
 0x354   :  { %4814 = vmatprep.mubr.msk.f32.mxu1 %vm66_vm3, %v3130_v1 }
 0x357   :  { %4815 = vmatmul.mubr.msk.f32.gmra.mrb[8].mxu1 %vm66_vm3, %v3131_v2 }
 0x358   :  { %4817 = vmatprep.mubr.msk.f32.mxu1 %vm66_vm3, %v3132_v4 }
 0x35b   :  { %4818 = vmatmul.mubr.msk.f32.gmra.mrb[10].mxu1 %vm66_vm3, %v3133_v5 }
 0x35c   :  { %4820 = vmatprep.mubr.msk.f32.mxu1 %vm66_vm3, %v3134_v6 }
 0x35f   :  { %4821 = vmatmul.mubr.msk.f32.gmra.mrb[12].mxu1 %vm66_vm3, %v3135_v7 }
 0x360   :  { %4823 = vmatprep.mubr.msk.f32.mxu1 %vm66_vm3, %v3136_v8 }
 0x363   :  { %4824 = vmatmul.mubr.msk.f32.gmra.mrb[14].mxu1 %vm66_vm3, %v3137_v10 }
 0x364   :  { %4828 = vmatprep.mubr.msk.f32.mxu1 %vm66_vm3, %v3121_v59 }
 0x367   :  { %4829 = vmatmul.mubr.msk.f32.vlgmr.msra.gmra.mrb[0].mxu1 %vm66_vm3, %v3122_v60 }
 0x368   :  { %4831 = vmatprep.mubr.msk.f32.mxu1 %vm66_vm3, %v3123_v61 }
 0x36b   :  { %4832 = vmatmul.mubr.msk.f32.gmra.mrb[2].mxu1 %vm66_vm3, %v3124_v62 }
 0x36c   :  { %4834 = vmatprep.mubr.msk.f32.mxu1 %vm66_vm3, %v3125_v63 }
 0x36f   :  { %4835 = vmatmul.mubr.msk.f32.gmra.mrb[4].mxu1 %vm66_vm3, %v3126_v0 }
 0x370   :  { %4837 = vmatprep.mubr.msk.f32.mxu1 %vm66_vm3, %v3127_v9 }
 0x373   :  { %4838 = vmatmul.mubr.msk.f32.gmra.mrb[6].mxu1 %vm66_vm3, %v3128_v11 }
 0x374   :  { %4840 = vmatprep.mubr.msk.f32.mxu1 %vm66_vm3, %v3131_v2 }
 0x377   :  { %4841 = vmatmul.mubr.msk.f32.gmra.mrb[8].mxu1 %vm66_vm3, %v3132_v4 }
 0x378   :  { %4843 = vmatprep.mubr.msk.f32.mxu1 %vm66_vm3, %v3133_v5 }
 0x37b   :  { %4844 = vmatmul.mubr.msk.f32.gmra.mrb[10].mxu1 %vm66_vm3, %v3134_v6 }
 0x37c   :  { %4846 = vmatprep.mubr.msk.f32.mxu1 %vm66_vm3, %v3135_v7 }
 0x37f   :  { %4847 = vmatmul.mubr.msk.f32.gmra.mrb[12].mxu1 %vm66_vm3, %v3136_v8 }
 0x380   :  { %4849 = vmatprep.mubr.msk.f32.mxu1 %vm66_vm3, %v3137_v10 }
 0x383   :  { %4850 = vmatmul.mubr.msk.f32.gmra.mrb[14].mxu1 %vm66_vm3, %v3138_v12 }
 0x43a   :  { %v4830_v14 = vpop.f32.mrb[0].mxu1 }
 0x43b   :  { %v3696_v15 = vadd.f32 %v4830_v14, %v4077_v13  ;;  %v3593_v16 = vpop.f32.mrb[1].mxu1 }
 0x43c   :  { %v3695_v17 = vadd.f32 %v4077_v13, %v3593_v16 }
 0x43d   :  { %v3712_v18 = vmax.f32 %v3696_v15, 0.0 }
 0x43e   :  { %v3711_v19 = vmax.f32 %v3695_v17, 0.0  ;;  %v4833_v20 = vpop.f32.mrb[2].mxu1 }
 0x43f   :  { %3728 = vst [vmem:[%s6082_s5 + $0x8] sm:$0xff] %v3712_v18  ;;  %v3698_v21 = vadd.f32 %v4833_v20, %v4077_v13  ;;  %v3603_v22 = vpop.f32.mrb[3].mxu1 }
 0x440   :  { %3727 = vst [vmem:[%s6082_s5] sm:$0xff] %v3711_v19  ;;  %v3697_v23 = vadd.f32 %v4077_v13, %v3603_v22 }
 0x441   :  { %v3714_v24 = vmax.f32 %v3698_v21, 0.0 }
 0x442   :  { %v3713_v25 = vmax.f32 %v3697_v23, 0.0  ;;  %v4836_v26 = vpop.f32.mrb[4].mxu1 }
 0x443   :  { %3730 = vst [vmem:[%s6082_s5 + $0x18] sm:$0xff] %v3714_v24  ;;  %v3700_v27 = vadd.f32 %v4836_v26, %v4077_v13  ;;  %v3613_v28 = vpop.f32.mrb[5].mxu1 }
 0x444   :  { %3729 = vst [vmem:[%s6082_s5 + $0x10] sm:$0xff] %v3713_v25  ;;  %v3699_v29 = vadd.f32 %v4077_v13, %v3613_v28 }
 0x445   :  { %v3716_v30 = vmax.f32 %v3700_v27, 0.0 }
 0x446   :  { %v3715_v31 = vmax.f32 %v3699_v29, 0.0  ;;  %v4839_v32 = vpop.f32.mrb[6].mxu1 }
 0x447   :  { %3732 = vst [vmem:[%s6082_s5 + $0x28] sm:$0xff] %v3716_v30  ;;  %v3702_v33 = vadd.f32 %v4839_v32, %v4077_v13  ;;  %v3623_v34 = vpop.f32.mrb[7].mxu1 }
 0x448   :  { %3731 = vst [vmem:[%s6082_s5 + $0x20] sm:$0xff] %v3715_v31  ;;  %v3701_v35 = vadd.f32 %v4077_v13, %v3623_v34 }
 0x449   :  { %v3718_v36 = vmax.f32 %v3702_v33, 0.0 }
 0x44a   :  { %v3717_v37 = vmax.f32 %v3701_v35, 0.0  ;;  %v4842_v38 = vpop.f32.mrb[8].mxu1 }
 0x44b   :  { %3734 = vst [vmem:[%s6082_s5 + $0x38] sm:$0xff] %v3718_v36  ;;  %v3704_v39 = vadd.f32 %v4842_v38, %v4077_v13  ;;  %v3633_v40 = vpop.f32.mrb[9].mxu1 }
 0x44c   :  { %3733 = vst [vmem:[%s6082_s5 + $0x30] sm:$0xff] %v3717_v37  ;;  %v3703_v41 = vadd.f32 %v4077_v13, %v3633_v40 }
 0x44d   :  { %v3720_v42 = vmax.f32 %v3704_v39, 0.0 }
 0x44e   :  { %v3719_v43 = vmax.f32 %v3703_v41, 0.0  ;;  %v4845_v44 = vpop.f32.mrb[10].mxu1 }
 0x44f   :  { %3736 = vst [vmem:[%s6082_s5 + $0x48] sm:$0xff] %v3720_v42  ;;  %v3706_v45 = vadd.f32 %v4845_v44, %v4077_v13  ;;  %v3643_v46 = vpop.f32.mrb[11].mxu1 }
 0x450   :  { %3735 = vst [vmem:[%s6082_s5 + $0x40] sm:$0xff] %v3719_v43  ;;  %v3705_v47 = vadd.f32 %v4077_v13, %v3643_v46 }
 0x451   :  { %v3722_v48 = vmax.f32 %v3706_v45, 0.0 }
 0x452   :  { %v3721_v49 = vmax.f32 %v3705_v47, 0.0  ;;  %v4848_v50 = vpop.f32.mrb[12].mxu1 }
 0x453   :  { %3738 = vst [vmem:[%s6082_s5 + $0x58] sm:$0xff] %v3722_v48  ;;  %v3708_v51 = vadd.f32 %v4848_v50, %v4077_v13  ;;  %v3653_v52 = vpop.f32.mrb[13].mxu1 }
 0x454   :  { %3737 = vst [vmem:[%s6082_s5 + $0x50] sm:$0xff] %v3721_v49  ;;  %v3707_v53 = vadd.f32 %v4077_v13, %v3653_v52 }
 0x455   :  { %v3724_v54 = vmax.f32 %v3708_v51, 0.0 }
 0x456   :  { %v3723_v55 = vmax.f32 %v3707_v53, 0.0  ;;  %v4851_v56 = vpop.f32.mrb[14].mxu1 }
 0x457   :  { %3740 = vst [vmem:[%s6082_s5 + $0x68] sm:$0xff] %v3724_v54  ;;  %v3710_v57 = vadd.f32 %v4851_v56, %v4077_v13  ;;  %v3663_v58 = vpop.f32.mrb[15].mxu1 }
 0x458   :  { %3739 = vst [vmem:[%s6082_s5 + $0x60] sm:$0xff] %v3723_v55  ;;  %v3709_v59 = vadd.f32 %v4077_v13, %v3663_v58 }
 0x459   :  { %v3726_v60 = vmax.f32 %v3710_v57, 0.0 }
 0x45a   :  { %v3725_v61 = vmax.f32 %v3709_v59, 0.0 }
 0x45b   :  { %3742 = vst [vmem:[%s6082_s5 + $0x78] sm:$0xff] %v3726_v60 }
 0x45c   :  { %3741 = vst [vmem:[%s6082_s5 + $0x70] sm:$0xff] %v3725_v61 }

</bundles_post_ra>
